<compile_context>
chip_gen: v6e
topology: v6e:2x2x1
jax: 0.10.0
libtpu: 0.0.40
codegen_flags: <defaults>
</compile_context>

<pallas_src>
import jax
import jax.numpy as jnp
from jax import lax
from jax.experimental import pallas as pl
from jax.experimental.pallas import tpu as pltpu

LANE = 128
SUBLANE = 8


def _lstm_kernel(x_ref,       # (T*Bp, D)   bf16, time-major rows: row = t*Bp + b
                 wih0_ref,    # (D, 4H)     bf16  (i/f/o cols pre-scaled by 0.5)
                 whh0_ref,    # (H, 4H)     bf16  (i/f/o cols pre-scaled by 0.5)
                 b0_ref,      # (1, 4H)     f32   (b_ih0 + b_hh0, i/f/o cols * 0.5)
                 w1cat_ref,   # (2H, 4H)    bf16  ([W_ih1 ; W_hh1], i/f/o cols * 0.5)
                 b1_ref,      # (1, 4H)     f32   (b_ih1 + b_hh1, i/f/o cols * 0.5)
                 wl1_ref,     # (H, Hp)     bf16  (linear1, lane-padded)
                 bl1_ref,     # (1, Hp)     f32
                 wl2_ref,     # (Hp, Op)    bf16  (linear2, lane-padded)
                 bl2_ref,     # (1, Op)     f32
                 out_ref,     # (Bp, Op)    f32
                 gx0_ref):    # scratch (T*Bp, 4H) f32
    TB, _ = x_ref.shape
    H = whh0_ref.shape[0]
    G = 4 * H
    Bp = out_ref.shape[0]
    T = TB // Bp

    # ---- Hoisted layer-0 input projection for ALL timesteps (one pipelineable
    # MXU matmul, bias folded in).  Keeps T tiny x@Wih pushes off the serial path.
    gx0_ref[...] = (
        jnp.dot(x_ref[...], wih0_ref[...], preferred_element_type=jnp.float32)
        + b0_ref[...])

    # Hoisted weight loads / broadcasts (outside the recurrence; JAX does not CSE
    # broadcast_in_dim).
    whh0 = whh0_ref[...]
    w1cat = w1cat_ref[...]
    b1b = jnp.broadcast_to(b1_ref[...], (Bp, G))

    # Lane mask selecting the "g" block (PyTorch gate order i, f, g, o).
    lane = lax.broadcasted_iota(jnp.int32, (Bp, G), 1)
    g_mask = (lane >= 2 * H) & (lane < 3 * H)

    def gate_math(gates, c):
        # Single full-width tanh on the (Bp, 4H) tile.  i/f/o columns arrive
        # pre-scaled by 0.5, so sigmoid(x) = 0.5*tanh(x/2) + 0.5; g column is raw
        # tanh.  One EUP chain + one select instead of sigmoid + tanh.
        t = jnp.tanh(gates)
        act = jnp.where(g_mask, t, 0.5 * t + 0.5)
        i = act[:, 0 * H:1 * H]
        f = act[:, 1 * H:2 * H]
        g = act[:, 2 * H:3 * H]
        o = act[:, 3 * H:4 * H]
        c_new = f * c + i * g                       # f32 cell math (v5e-friendly)
        h_new = (o * jnp.tanh(c_new)).astype(jnp.bfloat16)  # cast once; only MXU uses h
        return h_new, c_new

    def body(t, carry):
        h0, c0, h1, c1 = carry                      # h* bf16, c* f32
        # Layer 0: only the recurrent h @ Whh matmul is on the serial critical path.
        row = pl.multiple_of(t * Bp, SUBLANE)
        g0 = gx0_ref[pl.ds(row, Bp), :] + jnp.dot(
            h0, whh0, preferred_element_type=jnp.float32)
        h0, c0 = gate_math(g0, c0)
        # Layer 1: single fused matmul [h0_new, h1_prev] @ [Wih1 ; Whh1] (bf16, no cast).
        xcat = jnp.concatenate([h0, h1], axis=-1)
        g1 = jnp.dot(xcat, w1cat, preferred_element_type=jnp.float32) + b1b
        h1, c1 = gate_math(g1, c1)
        return (h0, c0, h1, c1)

    zc = jnp.zeros((Bp, H), jnp.float32)
    zh = jnp.zeros((Bp, H), jnp.bfloat16)
    _, _, h1, _ = lax.fori_loop(0, T, body, (zh, zc, zh, zc), unroll=True)

    # nn.Dropout(0.4) applied twice: identity in eval/inference mode.
    # TODO(synk): training-mode dropout (p=0.4) not implemented (inference semantics).

    hid = jnp.dot(h1, wl1_ref[...],
                  preferred_element_type=jnp.float32) + bl1_ref[...]
    hid = jnp.where(hid > 0, hid, 0.01 * hid)        # F.leaky_relu, default slope 0.01
    y = jnp.dot(hid.astype(wl2_ref.dtype), wl2_ref[...],
                preferred_element_type=jnp.float32) + bl2_ref[...]
    out_ref[...] = y.astype(out_ref.dtype)


def lstm_forward(x_btd, params):
    """x_btd: (batch, seq_len, input_dim) f32 -> (batch, output_dim) f32."""
    B, T, D = x_btd.shape
    H = params["whh0"].shape[0]
    Hh = params["w1"].shape[1]
    O = params["w2"].shape[1]

    # Pad batch to a multiple of the f32 sublane count (8).  Padded rows are
    # independent of the real rows and sliced off.
    Bp = ((B + SUBLANE - 1) // SUBLANE) * SUBLANE
    if Bp != B:
        x_btd = jnp.pad(x_btd, ((0, Bp - B), (0, 0), (0, 0)))

    # Time-major, flattened: row index = t*Bp + b (contiguous per-timestep slices).
    x_tb = jnp.transpose(x_btd, (1, 0, 2)).reshape(T * Bp, D)

    # Lane-pad the head Linears so the intermediate and the output store are
    # lane-dense (full 128-lane stores instead of masked vst on a width-1 output).
    Hp = ((Hh + LANE - 1) // LANE) * LANE
    Op = ((O + LANE - 1) // LANE) * LANE
    wl1 = jnp.pad(params["w1"], ((0, 0), (0, Hp - Hh)))
    bl1 = jnp.pad(params["bl1"], ((0, 0), (0, Hp - Hh)))
    wl2 = jnp.pad(params["w2"], ((0, Hp - Hh), (0, Op - O)))
    bl2 = jnp.pad(params["bl2"], ((0, 0), (0, Op - O)))

    # Fused layer-1 weight: one per-step matmul instead of two.
    w1cat = jnp.concatenate([params["wih1"], params["whh1"]], axis=0)   # (2H, 4H)

    # tanh-affine gate trick: sigmoid(x) = 0.5*tanh(x/2) + 0.5.  Pre-scale ONLY the
    # i/f/o gate columns (NOT the g columns) of every gate weight/bias by 0.5 so the
    # kernel needs a single full-width tanh per gate tile.
    gate_scale = jnp.concatenate([
        jnp.full((1, 2 * H), 0.5, jnp.float32),   # i, f
        jnp.ones((1, H), jnp.float32),            # g  (raw tanh, untouched)
        jnp.full((1, H), 0.5, jnp.float32),       # o
    ], axis=1)

    # Matmul operands in bf16 (f32 accumulation + f32 gate math inside the kernel).
    mm = jnp.bfloat16
    args = (x_tb.astype(mm),
            (params["wih0"] * gate_scale).astype(mm),
            (params["whh0"] * gate_scale).astype(mm),
            params["b0"] * gate_scale,
            (w1cat * gate_scale).astype(mm),
            params["b1"] * gate_scale,
            wl1.astype(mm), bl1,
            wl2.astype(mm), bl2)

    vmem = pl.BlockSpec(memory_space=pltpu.MemorySpace.VMEM)
    out = pl.pallas_call(
        _lstm_kernel,
        out_shape=jax.ShapeDtypeStruct((Bp, Op), jnp.float32),
        in_specs=[vmem] * len(args),
        out_specs=vmem,
        scratch_shapes=[pltpu.VMEM((T * Bp, 4 * H), jnp.float32)],
        compiler_params=pltpu.CompilerParams(
            vmem_limit_bytes=32 * 1024 * 1024),
    )(*args)
    return out[:B, :O]


def init_params(key, input_dim, hidden_dim, output_dim):
    """Deterministic synthetic parameters (PyTorch-style uniform init ranges)."""
    H = hidden_dim
    Hh = hidden_dim // 2
    k = 1.0 / jnp.sqrt(jnp.float32(H))
    keys = jax.random.split(key, 12)

    def u(k_, shape, bound):
        return jax.random.uniform(k_, shape, jnp.float32, -bound, bound)

    return {
        # layer 0 (weights stored transposed: x @ W), PyTorch gate order i,f,g,o
        "wih0": u(keys[0], (input_dim, 4 * H), k),
        "whh0": u(keys[1], (H, 4 * H), k),
        "b0":   u(keys[2], (1, 4 * H), k) + u(keys[3], (1, 4 * H), k),  # b_ih + b_hh
        # layer 1
        "wih1": u(keys[4], (H, 4 * H), k),
        "whh1": u(keys[5], (H, 4 * H), k),
        "b1":   u(keys[6], (1, 4 * H), k) + u(keys[7], (1, 4 * H), k),
        # linear1: hidden -> hidden//2
        "w1":  u(keys[8], (H, Hh), 1.0 / jnp.sqrt(jnp.float32(H))),
        "bl1": u(keys[9], (1, Hh), 1.0 / jnp.sqrt(jnp.float32(H))),
        # linear2: hidden//2 -> output_dim
        "w2":  u(keys[10], (Hh, output_dim), 1.0 / jnp.sqrt(jnp.float32(Hh))),
        "bl2": u(keys[11], (1, output_dim), 1.0 / jnp.sqrt(jnp.float32(Hh))),
    }


if __name__ == "__main__":
    batch, seq_len, input_dim, hidden_dim, output_dim = 2, 8, 4, 32, 1

    key = jax.random.PRNGKey(0)
    k_x, k_p = jax.random.split(key)
    x = jax.random.normal(k_x, (batch, seq_len, input_dim), jnp.float32)
    params = init_params(k_p, input_dim, hidden_dim, output_dim)

    y = lstm_forward(x, params)
    y = jax.block_until_ready(y)
    assert y.shape == (batch, output_dim)
    print("KERNEL_OK")
</pallas_src>

<mosaic_0001>
module attributes {stable_mosaic.version = 11 : i64} {
  func.func @_lstm_kernel(%arg0: memref<64x4xbf16, #tpu.memory_space<vmem>>, %arg1: memref<4x128xbf16, #tpu.memory_space<vmem>>, %arg2: memref<32x128xbf16, #tpu.memory_space<vmem>>, %arg3: memref<1x128xf32, #tpu.memory_space<vmem>>, %arg4: memref<64x128xbf16, #tpu.memory_space<vmem>>, %arg5: memref<1x128xf32, #tpu.memory_space<vmem>>, %arg6: memref<32x128xbf16, #tpu.memory_space<vmem>>, %arg7: memref<1x128xf32, #tpu.memory_space<vmem>>, %arg8: memref<128x128xbf16, #tpu.memory_space<vmem>>, %arg9: memref<1x128xf32, #tpu.memory_space<vmem>>, %arg10: memref<8x128xf32, #tpu.memory_space<vmem>>, %arg11: memref<64x128xf32, #tpu.memory_space<vmem>>) attributes {dimension_semantics = [], scalar_prefetch = 0 : i64, scratch_operands = 1 : i64, tpu.core_type = #tpu.core_type<tc>} {
    %c0 = arith.constant 0 : index
    %c0_0 = arith.constant 0 : index
    %0 = vector.load %arg0[%c0, %c0_0] : memref<64x4xbf16, #tpu.memory_space<vmem>>, vector<64x4xbf16>
    %c0_1 = arith.constant 0 : index
    %c0_2 = arith.constant 0 : index
    %1 = vector.load %arg1[%c0_1, %c0_2] : memref<4x128xbf16, #tpu.memory_space<vmem>>, vector<4x128xbf16>
    %cst = arith.constant dense<0.000000e+00> : vector<64x128xf32>
    %2 = tpu.matmul %0, %1, %cst {dimension_numbers = #tpu.dot_dimension_numbers<[1], [0], [0], [1], [0, 0, 1, 1], [], []>} : vector<64x4xbf16>, vector<4x128xbf16>, vector<64x128xf32> -> vector<64x128xf32>
    %c0_3 = arith.constant 0 : index
    %c0_4 = arith.constant 0 : index
    %3 = vector.load %arg3[%c0_3, %c0_4] : memref<1x128xf32, #tpu.memory_space<vmem>>, vector<1x128xf32>
    %4 = vector.broadcast %3 : vector<1x128xf32> to vector<64x128xf32>
    %5 = arith.addf %2, %4 : vector<64x128xf32>
    %c0_5 = arith.constant 0 : index
    %c0_6 = arith.constant 0 : index
    %6 = vector.load %arg11[%c0_5, %c0_6] : memref<64x128xf32, #tpu.memory_space<vmem>>, vector<64x128xf32>
    tpu.vector_store %arg11[%c0_5, %c0_6], %5 {strides = array<i32>} : memref<64x128xf32, #tpu.memory_space<vmem>>, vector<64x128xf32>,
    %c0_7 = arith.constant 0 : index
    %c0_8 = arith.constant 0 : index
    %7 = vector.load %arg2[%c0_7, %c0_8] : memref<32x128xbf16, #tpu.memory_space<vmem>>, vector<32x128xbf16>
    %c0_9 = arith.constant 0 : index
    %c0_10 = arith.constant 0 : index
    %8 = vector.load %arg4[%c0_9, %c0_10] : memref<64x128xbf16, #tpu.memory_space<vmem>>, vector<64x128xbf16>
    %c0_11 = arith.constant 0 : index
    %c0_12 = arith.constant 0 : index
    %9 = vector.load %arg5[%c0_11, %c0_12] : memref<1x128xf32, #tpu.memory_space<vmem>>, vector<1x128xf32>
    %10 = vector.shape_cast %9 : vector<1x128xf32> to vector<1x128xf32>
    %11 = vector.broadcast %10 : vector<1x128xf32> to vector<8x128xf32>
    %12 = tpu.iota {dimensions = array<i32: 1>} : vector<8x128xi32>
    %c64_i32 = arith.constant 64 : i32
    %13 = vector.broadcast %c64_i32 : i32 to vector<8x128xi32>
    %14 = arith.cmpi sge, %12, %13 : vector<8x128xi32>
    %c96_i32 = arith.constant 96 : i32
    %15 = vector.broadcast %c96_i32 : i32 to vector<8x128xi32>
    %16 = arith.cmpi slt, %12, %15 : vector<8x128xi32>
    %17 = arith.andi %14, %16 : vector<8x128xi1>
    %cst_13 = arith.constant 0.000000e+00 : f32
    %18 = vector.broadcast %cst_13 : f32 to vector<8x32xf32>
    %cst_14 = arith.constant 0.000000e+00 : bf16
    %19 = vector.broadcast %cst_14 : bf16 to vector<8x32xbf16>
    %c0_i32 = arith.constant 0 : i32
    %c8_i32 = arith.constant 8 : i32
    %20 = arith.muli %c0_i32, %c8_i32 : i32
    %21 = tpu.assume_multiple %20, 8 : i32
    %22 = arith.index_cast %21 : i32 to index
    %c0_15 = arith.constant 0 : index
    %23 = vector.load %arg11[%22, %c0_15] : memref<64x128xf32, #tpu.memory_space<vmem>>, vector<8x128xf32>
    %cst_16 = arith.constant dense<0.000000e+00> : vector<8x128xf32>
    %24 = tpu.matmul %19, %7, %cst_16 {dimension_numbers = #tpu.dot_dimension_numbers<[1], [0], [0], [1], [0, 0, 1, 1], [], []>} : vector<8x32xbf16>, vector<32x128xbf16>, vector<8x128xf32> -> vector<8x128xf32>
    %25 = arith.addf %23, %24 : vector<8x128xf32>
    %26 = math.tanh %25 : vector<8x128xf32>
    %cst_17 = arith.constant 5.000000e-01 : f32
    %27 = vector.broadcast %cst_17 : f32 to vector<8x128xf32>
    %28 = arith.mulf %27, %26 : vector<8x128xf32>
    %cst_18 = arith.constant 5.000000e-01 : f32
    %29 = vector.broadcast %cst_18 : f32 to vector<8x128xf32>
    %30 = arith.addf %28, %29 : vector<8x128xf32>
    %31 = arith.select %17, %26, %30 : vector<8x128xi1>, vector<8x128xf32>
    %32 = vector.extract_strided_slice %31 {offsets = [0, 0], sizes = [8, 32], strides = [1, 1]} : vector<8x128xf32> to vector<8x32xf32>
    %33 = vector.extract_strided_slice %31 {offsets = [0, 32], sizes = [8, 32], strides = [1, 1]} : vector<8x128xf32> to vector<8x32xf32>
    %34 = vector.extract_strided_slice %31 {offsets = [0, 64], sizes = [8, 32], strides = [1, 1]} : vector<8x128xf32> to vector<8x32xf32>
    %35 = vector.extract_strided_slice %31 {offsets = [0, 96], sizes = [8, 32], strides = [1, 1]} : vector<8x128xf32> to vector<8x32xf32>
    %36 = arith.mulf %33, %18 : vector<8x32xf32>
    %37 = arith.mulf %32, %34 : vector<8x32xf32>
    %38 = arith.addf %36, %37 : vector<8x32xf32>
    %39 = math.tanh %38 : vector<8x32xf32>
    %40 = arith.mulf %35, %39 : vector<8x32xf32>
    %41 = arith.truncf %40 : vector<8x32xf32> to vector<8x32xbf16>
    %42 = tpu.concatenate %41, %19 in 1 : vector<8x32xbf16>, vector<8x32xbf16> -> vector<8x64xbf16>
    %cst_19 = arith.constant dense<0.000000e+00> : vector<8x128xf32>
    %43 = tpu.matmul %42, %8, %cst_19 {dimension_numbers = #tpu.dot_dimension_numbers<[1], [0], [0], [1], [0, 0, 1, 1], [], []>} : vector<8x64xbf16>, vector<64x128xbf16>, vector<8x128xf32> -> vector<8x128xf32>
    %44 = arith.addf %43, %11 : vector<8x128xf32>
    %45 = math.tanh %44 : vector<8x128xf32>
    %cst_20 = arith.constant 5.000000e-01 : f32
    %46 = vector.broadcast %cst_20 : f32 to vector<8x128xf32>
    %47 = arith.mulf %46, %45 : vector<8x128xf32>
    %cst_21 = arith.constant 5.000000e-01 : f32
    %48 = vector.broadcast %cst_21 : f32 to vector<8x128xf32>
    %49 = arith.addf %47, %48 : vector<8x128xf32>
    %50 = arith.select %17, %45, %49 : vector<8x128xi1>, vector<8x128xf32>
    %51 = vector.extract_strided_slice %50 {offsets = [0, 0], sizes = [8, 32], strides = [1, 1]} : vector<8x128xf32> to vector<8x32xf32>
    %52 = vector.extract_strided_slice %50 {offsets = [0, 32], sizes = [8, 32], strides = [1, 1]} : vector<8x128xf32> to vector<8x32xf32>
    %53 = vector.extract_strided_slice %50 {offsets = [0, 64], sizes = [8, 32], strides = [1, 1]} : vector<8x128xf32> to vector<8x32xf32>
    %54 = vector.extract_strided_slice %50 {offsets = [0, 96], sizes = [8, 32], strides = [1, 1]} : vector<8x128xf32> to vector<8x32xf32>
    %55 = arith.mulf %52, %18 : vector<8x32xf32>
    %56 = arith.mulf %51, %53 : vector<8x32xf32>
    %57 = arith.addf %55, %56 : vector<8x32xf32>
    %58 = math.tanh %57 : vector<8x32xf32>
    %59 = arith.mulf %54, %58 : vector<8x32xf32>
    %60 = arith.truncf %59 : vector<8x32xf32> to vector<8x32xbf16>
    %c1_i32 = arith.constant 1 : i32
    %c8_i32_22 = arith.constant 8 : i32
    %61 = arith.muli %c1_i32, %c8_i32_22 : i32
    %62 = tpu.assume_multiple %61, 8 : i32
    %63 = arith.index_cast %62 : i32 to index
    %c0_23 = arith.constant 0 : index
    %64 = vector.load %arg11[%63, %c0_23] : memref<64x128xf32, #tpu.memory_space<vmem>>, vector<8x128xf32>
    %cst_24 = arith.constant dense<0.000000e+00> : vector<8x128xf32>
    %65 = tpu.matmul %41, %7, %cst_24 {dimension_numbers = #tpu.dot_dimension_numbers<[1], [0], [0], [1], [0, 0, 1, 1], [], []>} : vector<8x32xbf16>, vector<32x128xbf16>, vector<8x128xf32> -> vector<8x128xf32>
    %66 = arith.addf %64, %65 : vector<8x128xf32>
    %67 = math.tanh %66 : vector<8x128xf32>
    %cst_25 = arith.constant 5.000000e-01 : f32
    %68 = vector.broadcast %cst_25 : f32 to vector<8x128xf32>
    %69 = arith.mulf %68, %67 : vector<8x128xf32>
    %cst_26 = arith.constant 5.000000e-01 : f32
    %70 = vector.broadcast %cst_26 : f32 to vector<8x128xf32>
    %71 = arith.addf %69, %70 : vector<8x128xf32>
    %72 = arith.select %17, %67, %71 : vector<8x128xi1>, vector<8x128xf32>
    %73 = vector.extract_strided_slice %72 {offsets = [0, 0], sizes = [8, 32], strides = [1, 1]} : vector<8x128xf32> to vector<8x32xf32>
    %74 = vector.extract_strided_slice %72 {offsets = [0, 32], sizes = [8, 32], strides = [1, 1]} : vector<8x128xf32> to vector<8x32xf32>
    %75 = vector.extract_strided_slice %72 {offsets = [0, 64], sizes = [8, 32], strides = [1, 1]} : vector<8x128xf32> to vector<8x32xf32>
    %76 = vector.extract_strided_slice %72 {offsets = [0, 96], sizes = [8, 32], strides = [1, 1]} : vector<8x128xf32> to vector<8x32xf32>
    %77 = arith.mulf %74, %38 : vector<8x32xf32>
    %78 = arith.mulf %73, %75 : vector<8x32xf32>
    %79 = arith.addf %77, %78 : vector<8x32xf32>
    %80 = math.tanh %79 : vector<8x32xf32>
    %81 = arith.mulf %76, %80 : vector<8x32xf32>
    %82 = arith.truncf %81 : vector<8x32xf32> to vector<8x32xbf16>
    %83 = tpu.concatenate %82, %60 in 1 : vector<8x32xbf16>, vector<8x32xbf16> -> vector<8x64xbf16>
    %cst_27 = arith.constant dense<0.000000e+00> : vector<8x128xf32>
    %84 = tpu.matmul %83, %8, %cst_27 {dimension_numbers = #tpu.dot_dimension_numbers<[1], [0], [0], [1], [0, 0, 1, 1], [], []>} : vector<8x64xbf16>, vector<64x128xbf16>, vector<8x128xf32> -> vector<8x128xf32>
    %85 = arith.addf %84, %11 : vector<8x128xf32>
    %86 = math.tanh %85 : vector<8x128xf32>
    %cst_28 = arith.constant 5.000000e-01 : f32
    %87 = vector.broadcast %cst_28 : f32 to vector<8x128xf32>
    %88 = arith.mulf %87, %86 : vector<8x128xf32>
    %cst_29 = arith.constant 5.000000e-01 : f32
    %89 = vector.broadcast %cst_29 : f32 to vector<8x128xf32>
    %90 = arith.addf %88, %89 : vector<8x128xf32>
    %91 = arith.select %17, %86, %90 : vector<8x128xi1>, vector<8x128xf32>
    %92 = vector.extract_strided_slice %91 {offsets = [0, 0], sizes = [8, 32], strides = [1, 1]} : vector<8x128xf32> to vector<8x32xf32>
    %93 = vector.extract_strided_slice %91 {offsets = [0, 32], sizes = [8, 32], strides = [1, 1]} : vector<8x128xf32> to vector<8x32xf32>
    %94 = vector.extract_strided_slice %91 {offsets = [0, 64], sizes = [8, 32], strides = [1, 1]} : vector<8x128xf32> to vector<8x32xf32>
    %95 = vector.extract_strided_slice %91 {offsets = [0, 96], sizes = [8, 32], strides = [1, 1]} : vector<8x128xf32> to vector<8x32xf32>
    %96 = arith.mulf %93, %57 : vector<8x32xf32>
    %97 = arith.mulf %92, %94 : vector<8x32xf32>
    %98 = arith.addf %96, %97 : vector<8x32xf32>
    %99 = math.tanh %98 : vector<8x32xf32>
    %100 = arith.mulf %95, %99 : vector<8x32xf32>
    %101 = arith.truncf %100 : vector<8x32xf32> to vector<8x32xbf16>
    %c2_i32 = arith.constant 2 : i32
    %c8_i32_30 = arith.constant 8 : i32
    %102 = arith.muli %c2_i32, %c8_i32_30 : i32
    %103 = tpu.assume_multiple %102, 8 : i32
    %104 = arith.index_cast %103 : i32 to index
    %c0_31 = arith.constant 0 : index
    %105 = vector.load %arg11[%104, %c0_31] : memref<64x128xf32, #tpu.memory_space<vmem>>, vector<8x128xf32>
    %cst_32 = arith.constant dense<0.000000e+00> : vector<8x128xf32>
    %106 = tpu.matmul %82, %7, %cst_32 {dimension_numbers = #tpu.dot_dimension_numbers<[1], [0], [0], [1], [0, 0, 1, 1], [], []>} : vector<8x32xbf16>, vector<32x128xbf16>, vector<8x128xf32> -> vector<8x128xf32>
    %107 = arith.addf %105, %106 : vector<8x128xf32>
    %108 = math.tanh %107 : vector<8x128xf32>
    %cst_33 = arith.constant 5.000000e-01 : f32
    %109 = vector.broadcast %cst_33 : f32 to vector<8x128xf32>
    %110 = arith.mulf %109, %108 : vector<8x128xf32>
    %cst_34 = arith.constant 5.000000e-01 : f32
    %111 = vector.broadcast %cst_34 : f32 to vector<8x128xf32>
    %112 = arith.addf %110, %111 : vector<8x128xf32>
    %113 = arith.select %17, %108, %112 : vector<8x128xi1>, vector<8x128xf32>
    %114 = vector.extract_strided_slice %113 {offsets = [0, 0], sizes = [8, 32], strides = [1, 1]} : vector<8x128xf32> to vector<8x32xf32>
    %115 = vector.extract_strided_slice %113 {offsets = [0, 32], sizes = [8, 32], strides = [1, 1]} : vector<8x128xf32> to vector<8x32xf32>
    %116 = vector.extract_strided_slice %113 {offsets = [0, 64], sizes = [8, 32], strides = [1, 1]} : vector<8x128xf32> to vector<8x32xf32>
    %117 = vector.extract_strided_slice %113 {offsets = [0, 96], sizes = [8, 32], strides = [1, 1]} : vector<8x128xf32> to vector<8x32xf32>
    %118 = arith.mulf %115, %79 : vector<8x32xf32>
    %119 = arith.mulf %114, %116 : vector<8x32xf32>
    %120 = arith.addf %118, %119 : vector<8x32xf32>
    %121 = math.tanh %120 : vector<8x32xf32>
    %122 = arith.mulf %117, %121 : vector<8x32xf32>
    %123 = arith.truncf %122 : vector<8x32xf32> to vector<8x32xbf16>
    %124 = tpu.concatenate %123, %101 in 1 : vector<8x32xbf16>, vector<8x32xbf16> -> vector<8x64xbf16>
    %cst_35 = arith.constant dense<0.000000e+00> : vector<8x128xf32>
    %125 = tpu.matmul %124, %8, %cst_35 {dimension_numbers = #tpu.dot_dimension_numbers<[1], [0], [0], [1], [0, 0, 1, 1], [], []>} : vector<8x64xbf16>, vector<64x128xbf16>, vector<8x128xf32> -> vector<8x128xf32>
    %126 = arith.addf %125, %11 : vector<8x128xf32>
    %127 = math.tanh %126 : vector<8x128xf32>
    %cst_36 = arith.constant 5.000000e-01 : f32
    %128 = vector.broadcast %cst_36 : f32 to vector<8x128xf32>
    %129 = arith.mulf %128, %127 : vector<8x128xf32>
    %cst_37 = arith.constant 5.000000e-01 : f32
    %130 = vector.broadcast %cst_37 : f32 to vector<8x128xf32>
    %131 = arith.addf %129, %130 : vector<8x128xf32>
    %132 = arith.select %17, %127, %131 : vector<8x128xi1>, vector<8x128xf32>
    %133 = vector.extract_strided_slice %132 {offsets = [0, 0], sizes = [8, 32], strides = [1, 1]} : vector<8x128xf32> to vector<8x32xf32>
    %134 = vector.extract_strided_slice %132 {offsets = [0, 32], sizes = [8, 32], strides = [1, 1]} : vector<8x128xf32> to vector<8x32xf32>
    %135 = vector.extract_strided_slice %132 {offsets = [0, 64], sizes = [8, 32], strides = [1, 1]} : vector<8x128xf32> to vector<8x32xf32>
    %136 = vector.extract_strided_slice %132 {offsets = [0, 96], sizes = [8, 32], strides = [1, 1]} : vector<8x128xf32> to vector<8x32xf32>
    %137 = arith.mulf %134, %98 : vector<8x32xf32>
    %138 = arith.mulf %133, %135 : vector<8x32xf32>
    %139 = arith.addf %137, %138 : vector<8x32xf32>
    %140 = math.tanh %139 : vector<8x32xf32>
    %141 = arith.mulf %136, %140 : vector<8x32xf32>
    %142 = arith.truncf %141 : vector<8x32xf32> to vector<8x32xbf16>
    %c3_i32 = arith.constant 3 : i32
    %c8_i32_38 = arith.constant 8 : i32
    %143 = arith.muli %c3_i32, %c8_i32_38 : i32
    %144 = tpu.assume_multiple %143, 8 : i32
    %145 = arith.index_cast %144 : i32 to index
    %c0_39 = arith.constant 0 : index
    %146 = vector.load %arg11[%145, %c0_39] : memref<64x128xf32, #tpu.memory_space<vmem>>, vector<8x128xf32>
    %cst_40 = arith.constant dense<0.000000e+00> : vector<8x128xf32>
    %147 = tpu.matmul %123, %7, %cst_40 {dimension_numbers = #tpu.dot_dimension_numbers<[1], [0], [0], [1], [0, 0, 1, 1], [], []>} : vector<8x32xbf16>, vector<32x128xbf16>, vector<8x128xf32> -> vector<8x128xf32>
    %148 = arith.addf %146, %147 : vector<8x128xf32>
    %149 = math.tanh %148 : vector<8x128xf32>
    %cst_41 = arith.constant 5.000000e-01 : f32
    %150 = vector.broadcast %cst_41 : f32 to vector<8x128xf32>
    %151 = arith.mulf %150, %149 : vector<8x128xf32>
    %cst_42 = arith.constant 5.000000e-01 : f32
    %152 = vector.broadcast %cst_42 : f32 to vector<8x128xf32>
    %153 = arith.addf %151, %152 : vector<8x128xf32>
    %154 = arith.select %17, %149, %153 : vector<8x128xi1>, vector<8x128xf32>
    %155 = vector.extract_strided_slice %154 {offsets = [0, 0], sizes = [8, 32], strides = [1, 1]} : vector<8x128xf32> to vector<8x32xf32>
    %156 = vector.extract_strided_slice %154 {offsets = [0, 32], sizes = [8, 32], strides = [1, 1]} : vector<8x128xf32> to vector<8x32xf32>
    %157 = vector.extract_strided_slice %154 {offsets = [0, 64], sizes = [8, 32], strides = [1, 1]} : vector<8x128xf32> to vector<8x32xf32>
    %158 = vector.extract_strided_slice %154 {offsets = [0, 96], sizes = [8, 32], strides = [1, 1]} : vector<8x128xf32> to vector<8x32xf32>
    %159 = arith.mulf %156, %120 : vector<8x32xf32>
    %160 = arith.mulf %155, %157 : vector<8x32xf32>
    %161 = arith.addf %159, %160 : vector<8x32xf32>
    %162 = math.tanh %161 : vector<8x32xf32>
    %163 = arith.mulf %158, %162 : vector<8x32xf32>
    %164 = arith.truncf %163 : vector<8x32xf32> to vector<8x32xbf16>
    %165 = tpu.concatenate %164, %142 in 1 : vector<8x32xbf16>, vector<8x32xbf16> -> vector<8x64xbf16>
    %cst_43 = arith.constant dense<0.000000e+00> : vector<8x128xf32>
    %166 = tpu.matmul %165, %8, %cst_43 {dimension_numbers = #tpu.dot_dimension_numbers<[1], [0], [0], [1], [0, 0, 1, 1], [], []>} : vector<8x64xbf16>, vector<64x128xbf16>, vector<8x128xf32> -> vector<8x128xf32>
    %167 = arith.addf %166, %11 : vector<8x128xf32>
    %168 = math.tanh %167 : vector<8x128xf32>
    %cst_44 = arith.constant 5.000000e-01 : f32
    %169 = vector.broadcast %cst_44 : f32 to vector<8x128xf32>
    %170 = arith.mulf %169, %168 : vector<8x128xf32>
    %cst_45 = arith.constant 5.000000e-01 : f32
    %171 = vector.broadcast %cst_45 : f32 to vector<8x128xf32>
    %172 = arith.addf %170, %171 : vector<8x128xf32>
    %173 = arith.select %17, %168, %172 : vector<8x128xi1>, vector<8x128xf32>
    %174 = vector.extract_strided_slice %173 {offsets = [0, 0], sizes = [8, 32], strides = [1, 1]} : vector<8x128xf32> to vector<8x32xf32>
    %175 = vector.extract_strided_slice %173 {offsets = [0, 32], sizes = [8, 32], strides = [1, 1]} : vector<8x128xf32> to vector<8x32xf32>
    %176 = vector.extract_strided_slice %173 {offsets = [0, 64], sizes = [8, 32], strides = [1, 1]} : vector<8x128xf32> to vector<8x32xf32>
    %177 = vector.extract_strided_slice %173 {offsets = [0, 96], sizes = [8, 32], strides = [1, 1]} : vector<8x128xf32> to vector<8x32xf32>
    %178 = arith.mulf %175, %139 : vector<8x32xf32>
    %179 = arith.mulf %174, %176 : vector<8x32xf32>
    %180 = arith.addf %178, %179 : vector<8x32xf32>
    %181 = math.tanh %180 : vector<8x32xf32>
    %182 = arith.mulf %177, %181 : vector<8x32xf32>
    %183 = arith.truncf %182 : vector<8x32xf32> to vector<8x32xbf16>
    %c4_i32 = arith.constant 4 : i32
    %c8_i32_46 = arith.constant 8 : i32
    %184 = arith.muli %c4_i32, %c8_i32_46 : i32
    %185 = tpu.assume_multiple %184, 8 : i32
    %186 = arith.index_cast %185 : i32 to index
    %c0_47 = arith.constant 0 : index
    %187 = vector.load %arg11[%186, %c0_47] : memref<64x128xf32, #tpu.memory_space<vmem>>, vector<8x128xf32>
    %cst_48 = arith.constant dense<0.000000e+00> : vector<8x128xf32>
    %188 = tpu.matmul %164, %7, %cst_48 {dimension_numbers = #tpu.dot_dimension_numbers<[1], [0], [0], [1], [0, 0, 1, 1], [], []>} : vector<8x32xbf16>, vector<32x128xbf16>, vector<8x128xf32> -> vector<8x128xf32>
    %189 = arith.addf %187, %188 : vector<8x128xf32>
    %190 = math.tanh %189 : vector<8x128xf32>
    %cst_49 = arith.constant 5.000000e-01 : f32
    %191 = vector.broadcast %cst_49 : f32 to vector<8x128xf32>
    %192 = arith.mulf %191, %190 : vector<8x128xf32>
    %cst_50 = arith.constant 5.000000e-01 : f32
    %193 = vector.broadcast %cst_50 : f32 to vector<8x128xf32>
    %194 = arith.addf %192, %193 : vector<8x128xf32>
    %195 = arith.select %17, %190, %194 : vector<8x128xi1>, vector<8x128xf32>
    %196 = vector.extract_strided_slice %195 {offsets = [0, 0], sizes = [8, 32], strides = [1, 1]} : vector<8x128xf32> to vector<8x32xf32>
    %197 = vector.extract_strided_slice %195 {offsets = [0, 32], sizes = [8, 32], strides = [1, 1]} : vector<8x128xf32> to vector<8x32xf32>
    %198 = vector.extract_strided_slice %195 {offsets = [0, 64], sizes = [8, 32], strides = [1, 1]} : vector<8x128xf32> to vector<8x32xf32>
    %199 = vector.extract_strided_slice %195 {offsets = [0, 96], sizes = [8, 32], strides = [1, 1]} : vector<8x128xf32> to vector<8x32xf32>
    %200 = arith.mulf %197, %161 : vector<8x32xf32>
    %201 = arith.mulf %196, %198 : vector<8x32xf32>
    %202 = arith.addf %200, %201 : vector<8x32xf32>
    %203 = math.tanh %202 : vector<8x32xf32>
    %204 = arith.mulf %199, %203 : vector<8x32xf32>
    %205 = arith.truncf %204 : vector<8x32xf32> to vector<8x32xbf16>
    %206 = tpu.concatenate %205, %183 in 1 : vector<8x32xbf16>, vector<8x32xbf16> -> vector<8x64xbf16>
    %cst_51 = arith.constant dense<0.000000e+00> : vector<8x128xf32>
    %207 = tpu.matmul %206, %8, %cst_51 {dimension_numbers = #tpu.dot_dimension_numbers<[1], [0], [0], [1], [0, 0, 1, 1], [], []>} : vector<8x64xbf16>, vector<64x128xbf16>, vector<8x128xf32> -> vector<8x128xf32>
    %208 = arith.addf %207, %11 : vector<8x128xf32>
    %209 = math.tanh %208 : vector<8x128xf32>
    %cst_52 = arith.constant 5.000000e-01 : f32
    %210 = vector.broadcast %cst_52 : f32 to vector<8x128xf32>
    %211 = arith.mulf %210, %209 : vector<8x128xf32>
    %cst_53 = arith.constant 5.000000e-01 : f32
    %212 = vector.broadcast %cst_53 : f32 to vector<8x128xf32>
    %213 = arith.addf %211, %212 : vector<8x128xf32>
    %214 = arith.select %17, %209, %213 : vector<8x128xi1>, vector<8x128xf32>
    %215 = vector.extract_strided_slice %214 {offsets = [0, 0], sizes = [8, 32], strides = [1, 1]} : vector<8x128xf32> to vector<8x32xf32>
    %216 = vector.extract_strided_slice %214 {offsets = [0, 32], sizes = [8, 32], strides = [1, 1]} : vector<8x128xf32> to vector<8x32xf32>
    %217 = vector.extract_strided_slice %214 {offsets = [0, 64], sizes = [8, 32], strides = [1, 1]} : vector<8x128xf32> to vector<8x32xf32>
    %218 = vector.extract_strided_slice %214 {offsets = [0, 96], sizes = [8, 32], strides = [1, 1]} : vector<8x128xf32> to vector<8x32xf32>
    %219 = arith.mulf %216, %180 : vector<8x32xf32>
    %220 = arith.mulf %215, %217 : vector<8x32xf32>
    %221 = arith.addf %219, %220 : vector<8x32xf32>
    %222 = math.tanh %221 : vector<8x32xf32>
    %223 = arith.mulf %218, %222 : vector<8x32xf32>
    %224 = arith.truncf %223 : vector<8x32xf32> to vector<8x32xbf16>
    %c5_i32 = arith.constant 5 : i32
    %c8_i32_54 = arith.constant 8 : i32
    %225 = arith.muli %c5_i32, %c8_i32_54 : i32
    %226 = tpu.assume_multiple %225, 8 : i32
    %227 = arith.index_cast %226 : i32 to index
    %c0_55 = arith.constant 0 : index
    %228 = vector.load %arg11[%227, %c0_55] : memref<64x128xf32, #tpu.memory_space<vmem>>, vector<8x128xf32>
    %cst_56 = arith.constant dense<0.000000e+00> : vector<8x128xf32>
    %229 = tpu.matmul %205, %7, %cst_56 {dimension_numbers = #tpu.dot_dimension_numbers<[1], [0], [0], [1], [0, 0, 1, 1], [], []>} : vector<8x32xbf16>, vector<32x128xbf16>, vector<8x128xf32> -> vector<8x128xf32>
    %230 = arith.addf %228, %229 : vector<8x128xf32>
    %231 = math.tanh %230 : vector<8x128xf32>
    %cst_57 = arith.constant 5.000000e-01 : f32
    %232 = vector.broadcast %cst_57 : f32 to vector<8x128xf32>
    %233 = arith.mulf %232, %231 : vector<8x128xf32>
    %cst_58 = arith.constant 5.000000e-01 : f32
    %234 = vector.broadcast %cst_58 : f32 to vector<8x128xf32>
    %235 = arith.addf %233, %234 : vector<8x128xf32>
    %236 = arith.select %17, %231, %235 : vector<8x128xi1>, vector<8x128xf32>
    %237 = vector.extract_strided_slice %236 {offsets = [0, 0], sizes = [8, 32], strides = [1, 1]} : vector<8x128xf32> to vector<8x32xf32>
    %238 = vector.extract_strided_slice %236 {offsets = [0, 32], sizes = [8, 32], strides = [1, 1]} : vector<8x128xf32> to vector<8x32xf32>
    %239 = vector.extract_strided_slice %236 {offsets = [0, 64], sizes = [8, 32], strides = [1, 1]} : vector<8x128xf32> to vector<8x32xf32>
    %240 = vector.extract_strided_slice %236 {offsets = [0, 96], sizes = [8, 32], strides = [1, 1]} : vector<8x128xf32> to vector<8x32xf32>
    %241 = arith.mulf %238, %202 : vector<8x32xf32>
    %242 = arith.mulf %237, %239 : vector<8x32xf32>
    %243 = arith.addf %241, %242 : vector<8x32xf32>
    %244 = math.tanh %243 : vector<8x32xf32>
    %245 = arith.mulf %240, %244 : vector<8x32xf32>
    %246 = arith.truncf %245 : vector<8x32xf32> to vector<8x32xbf16>
    %247 = tpu.concatenate %246, %224 in 1 : vector<8x32xbf16>, vector<8x32xbf16> -> vector<8x64xbf16>
    %cst_59 = arith.constant dense<0.000000e+00> : vector<8x128xf32>
    %248 = tpu.matmul %247, %8, %cst_59 {dimension_numbers = #tpu.dot_dimension_numbers<[1], [0], [0], [1], [0, 0, 1, 1], [], []>} : vector<8x64xbf16>, vector<64x128xbf16>, vector<8x128xf32> -> vector<8x128xf32>
    %249 = arith.addf %248, %11 : vector<8x128xf32>
    %250 = math.tanh %249 : vector<8x128xf32>
    %cst_60 = arith.constant 5.000000e-01 : f32
    %251 = vector.broadcast %cst_60 : f32 to vector<8x128xf32>
    %252 = arith.mulf %251, %250 : vector<8x128xf32>
    %cst_61 = arith.constant 5.000000e-01 : f32
    %253 = vector.broadcast %cst_61 : f32 to vector<8x128xf32>
    %254 = arith.addf %252, %253 : vector<8x128xf32>
    %255 = arith.select %17, %250, %254 : vector<8x128xi1>, vector<8x128xf32>
    %256 = vector.extract_strided_slice %255 {offsets = [0, 0], sizes = [8, 32], strides = [1, 1]} : vector<8x128xf32> to vector<8x32xf32>
    %257 = vector.extract_strided_slice %255 {offsets = [0, 32], sizes = [8, 32], strides = [1, 1]} : vector<8x128xf32> to vector<8x32xf32>
    %258 = vector.extract_strided_slice %255 {offsets = [0, 64], sizes = [8, 32], strides = [1, 1]} : vector<8x128xf32> to vector<8x32xf32>
    %259 = vector.extract_strided_slice %255 {offsets = [0, 96], sizes = [8, 32], strides = [1, 1]} : vector<8x128xf32> to vector<8x32xf32>
    %260 = arith.mulf %257, %221 : vector<8x32xf32>
    %261 = arith.mulf %256, %258 : vector<8x32xf32>
    %262 = arith.addf %260, %261 : vector<8x32xf32>
    %263 = math.tanh %262 : vector<8x32xf32>
    %264 = arith.mulf %259, %263 : vector<8x32xf32>
    %265 = arith.truncf %264 : vector<8x32xf32> to vector<8x32xbf16>
    %c6_i32 = arith.constant 6 : i32
    %c8_i32_62 = arith.constant 8 : i32
    %266 = arith.muli %c6_i32, %c8_i32_62 : i32
    %267 = tpu.assume_multiple %266, 8 : i32
    %268 = arith.index_cast %267 : i32 to index
    %c0_63 = arith.constant 0 : index
    %269 = vector.load %arg11[%268, %c0_63] : memref<64x128xf32, #tpu.memory_space<vmem>>, vector<8x128xf32>
    %cst_64 = arith.constant dense<0.000000e+00> : vector<8x128xf32>
    %270 = tpu.matmul %246, %7, %cst_64 {dimension_numbers = #tpu.dot_dimension_numbers<[1], [0], [0], [1], [0, 0, 1, 1], [], []>} : vector<8x32xbf16>, vector<32x128xbf16>, vector<8x128xf32> -> vector<8x128xf32>
    %271 = arith.addf %269, %270 : vector<8x128xf32>
    %272 = math.tanh %271 : vector<8x128xf32>
    %cst_65 = arith.constant 5.000000e-01 : f32
    %273 = vector.broadcast %cst_65 : f32 to vector<8x128xf32>
    %274 = arith.mulf %273, %272 : vector<8x128xf32>
    %cst_66 = arith.constant 5.000000e-01 : f32
    %275 = vector.broadcast %cst_66 : f32 to vector<8x128xf32>
    %276 = arith.addf %274, %275 : vector<8x128xf32>
    %277 = arith.select %17, %272, %276 : vector<8x128xi1>, vector<8x128xf32>
    %278 = vector.extract_strided_slice %277 {offsets = [0, 0], sizes = [8, 32], strides = [1, 1]} : vector<8x128xf32> to vector<8x32xf32>
    %279 = vector.extract_strided_slice %277 {offsets = [0, 32], sizes = [8, 32], strides = [1, 1]} : vector<8x128xf32> to vector<8x32xf32>
    %280 = vector.extract_strided_slice %277 {offsets = [0, 64], sizes = [8, 32], strides = [1, 1]} : vector<8x128xf32> to vector<8x32xf32>
    %281 = vector.extract_strided_slice %277 {offsets = [0, 96], sizes = [8, 32], strides = [1, 1]} : vector<8x128xf32> to vector<8x32xf32>
    %282 = arith.mulf %279, %243 : vector<8x32xf32>
    %283 = arith.mulf %278, %280 : vector<8x32xf32>
    %284 = arith.addf %282, %283 : vector<8x32xf32>
    %285 = math.tanh %284 : vector<8x32xf32>
    %286 = arith.mulf %281, %285 : vector<8x32xf32>
    %287 = arith.truncf %286 : vector<8x32xf32> to vector<8x32xbf16>
    %288 = tpu.concatenate %287, %265 in 1 : vector<8x32xbf16>, vector<8x32xbf16> -> vector<8x64xbf16>
    %cst_67 = arith.constant dense<0.000000e+00> : vector<8x128xf32>
    %289 = tpu.matmul %288, %8, %cst_67 {dimension_numbers = #tpu.dot_dimension_numbers<[1], [0], [0], [1], [0, 0, 1, 1], [], []>} : vector<8x64xbf16>, vector<64x128xbf16>, vector<8x128xf32> -> vector<8x128xf32>
    %290 = arith.addf %289, %11 : vector<8x128xf32>
    %291 = math.tanh %290 : vector<8x128xf32>
    %cst_68 = arith.constant 5.000000e-01 : f32
    %292 = vector.broadcast %cst_68 : f32 to vector<8x128xf32>
    %293 = arith.mulf %292, %291 : vector<8x128xf32>
    %cst_69 = arith.constant 5.000000e-01 : f32
    %294 = vector.broadcast %cst_69 : f32 to vector<8x128xf32>
    %295 = arith.addf %293, %294 : vector<8x128xf32>
    %296 = arith.select %17, %291, %295 : vector<8x128xi1>, vector<8x128xf32>
    %297 = vector.extract_strided_slice %296 {offsets = [0, 0], sizes = [8, 32], strides = [1, 1]} : vector<8x128xf32> to vector<8x32xf32>
    %298 = vector.extract_strided_slice %296 {offsets = [0, 32], sizes = [8, 32], strides = [1, 1]} : vector<8x128xf32> to vector<8x32xf32>
    %299 = vector.extract_strided_slice %296 {offsets = [0, 64], sizes = [8, 32], strides = [1, 1]} : vector<8x128xf32> to vector<8x32xf32>
    %300 = vector.extract_strided_slice %296 {offsets = [0, 96], sizes = [8, 32], strides = [1, 1]} : vector<8x128xf32> to vector<8x32xf32>
    %301 = arith.mulf %298, %262 : vector<8x32xf32>
    %302 = arith.mulf %297, %299 : vector<8x32xf32>
    %303 = arith.addf %301, %302 : vector<8x32xf32>
    %304 = math.tanh %303 : vector<8x32xf32>
    %305 = arith.mulf %300, %304 : vector<8x32xf32>
    %306 = arith.truncf %305 : vector<8x32xf32> to vector<8x32xbf16>
    %c7_i32 = arith.constant 7 : i32
    %c8_i32_70 = arith.constant 8 : i32
    %307 = arith.muli %c7_i32, %c8_i32_70 : i32
    %308 = tpu.assume_multiple %307, 8 : i32
    %309 = arith.index_cast %308 : i32 to index
    %c0_71 = arith.constant 0 : index
    %310 = vector.load %arg11[%309, %c0_71] : memref<64x128xf32, #tpu.memory_space<vmem>>, vector<8x128xf32>
    %cst_72 = arith.constant dense<0.000000e+00> : vector<8x128xf32>
    %311 = tpu.matmul %287, %7, %cst_72 {dimension_numbers = #tpu.dot_dimension_numbers<[1], [0], [0], [1], [0, 0, 1, 1], [], []>} : vector<8x32xbf16>, vector<32x128xbf16>, vector<8x128xf32> -> vector<8x128xf32>
    %312 = arith.addf %310, %311 : vector<8x128xf32>
    %313 = math.tanh %312 : vector<8x128xf32>
    %cst_73 = arith.constant 5.000000e-01 : f32
    %314 = vector.broadcast %cst_73 : f32 to vector<8x128xf32>
    %315 = arith.mulf %314, %313 : vector<8x128xf32>
    %cst_74 = arith.constant 5.000000e-01 : f32
    %316 = vector.broadcast %cst_74 : f32 to vector<8x128xf32>
    %317 = arith.addf %315, %316 : vector<8x128xf32>
    %318 = arith.select %17, %313, %317 : vector<8x128xi1>, vector<8x128xf32>
    %319 = vector.extract_strided_slice %318 {offsets = [0, 0], sizes = [8, 32], strides = [1, 1]} : vector<8x128xf32> to vector<8x32xf32>
    %320 = vector.extract_strided_slice %318 {offsets = [0, 32], sizes = [8, 32], strides = [1, 1]} : vector<8x128xf32> to vector<8x32xf32>
    %321 = vector.extract_strided_slice %318 {offsets = [0, 64], sizes = [8, 32], strides = [1, 1]} : vector<8x128xf32> to vector<8x32xf32>
    %322 = vector.extract_strided_slice %318 {offsets = [0, 96], sizes = [8, 32], strides = [1, 1]} : vector<8x128xf32> to vector<8x32xf32>
    %323 = arith.mulf %320, %284 : vector<8x32xf32>
    %324 = arith.mulf %319, %321 : vector<8x32xf32>
    %325 = arith.addf %323, %324 : vector<8x32xf32>
    %326 = math.tanh %325 : vector<8x32xf32>
    %327 = arith.mulf %322, %326 : vector<8x32xf32>
    %328 = arith.truncf %327 : vector<8x32xf32> to vector<8x32xbf16>
    %329 = tpu.concatenate %328, %306 in 1 : vector<8x32xbf16>, vector<8x32xbf16> -> vector<8x64xbf16>
    %cst_75 = arith.constant dense<0.000000e+00> : vector<8x128xf32>
    %330 = tpu.matmul %329, %8, %cst_75 {dimension_numbers = #tpu.dot_dimension_numbers<[1], [0], [0], [1], [0, 0, 1, 1], [], []>} : vector<8x64xbf16>, vector<64x128xbf16>, vector<8x128xf32> -> vector<8x128xf32>
    %331 = arith.addf %330, %11 : vector<8x128xf32>
    %332 = math.tanh %331 : vector<8x128xf32>
    %cst_76 = arith.constant 5.000000e-01 : f32
    %333 = vector.broadcast %cst_76 : f32 to vector<8x128xf32>
    %334 = arith.mulf %333, %332 : vector<8x128xf32>
    %cst_77 = arith.constant 5.000000e-01 : f32
    %335 = vector.broadcast %cst_77 : f32 to vector<8x128xf32>
    %336 = arith.addf %334, %335 : vector<8x128xf32>
    %337 = arith.select %17, %332, %336 : vector<8x128xi1>, vector<8x128xf32>
    %338 = vector.extract_strided_slice %337 {offsets = [0, 0], sizes = [8, 32], strides = [1, 1]} : vector<8x128xf32> to vector<8x32xf32>
    %339 = vector.extract_strided_slice %337 {offsets = [0, 32], sizes = [8, 32], strides = [1, 1]} : vector<8x128xf32> to vector<8x32xf32>
    %340 = vector.extract_strided_slice %337 {offsets = [0, 64], sizes = [8, 32], strides = [1, 1]} : vector<8x128xf32> to vector<8x32xf32>
    %341 = vector.extract_strided_slice %337 {offsets = [0, 96], sizes = [8, 32], strides = [1, 1]} : vector<8x128xf32> to vector<8x32xf32>
    %342 = arith.mulf %339, %303 : vector<8x32xf32>
    %343 = arith.mulf %338, %340 : vector<8x32xf32>
    %344 = arith.addf %342, %343 : vector<8x32xf32>
    %345 = math.tanh %344 : vector<8x32xf32>
    %346 = arith.mulf %341, %345 : vector<8x32xf32>
    %347 = arith.truncf %346 : vector<8x32xf32> to vector<8x32xbf16>
    %c8_i32_78 = arith.constant 8 : i32
    %c0_79 = arith.constant 0 : index
    %c0_80 = arith.constant 0 : index
    %348 = vector.load %arg6[%c0_79, %c0_80] : memref<32x128xbf16, #tpu.memory_space<vmem>>, vector<32x128xbf16>
    %cst_81 = arith.constant dense<0.000000e+00> : vector<8x128xf32>
    %349 = tpu.matmul %347, %348, %cst_81 {dimension_numbers = #tpu.dot_dimension_numbers<[1], [0], [0], [1], [0, 0, 1, 1], [], []>} : vector<8x32xbf16>, vector<32x128xbf16>, vector<8x128xf32> -> vector<8x128xf32>
    %c0_82 = arith.constant 0 : index
    %c0_83 = arith.constant 0 : index
    %350 = vector.load %arg7[%c0_82, %c0_83] : memref<1x128xf32, #tpu.memory_space<vmem>>, vector<1x128xf32>
    %351 = vector.broadcast %350 : vector<1x128xf32> to vector<8x128xf32>
    %352 = arith.addf %349, %351 : vector<8x128xf32>
    %cst_84 = arith.constant 0.000000e+00 : f32
    %353 = vector.broadcast %cst_84 : f32 to vector<8x128xf32>
    %354 = arith.cmpf ogt, %352, %353 : vector<8x128xf32>
    %cst_85 = arith.constant 0.00999999977 : f32
    %355 = vector.broadcast %cst_85 : f32 to vector<8x128xf32>
    %356 = arith.mulf %355, %352 : vector<8x128xf32>
    %357 = arith.select %354, %352, %356 : vector<8x128xi1>, vector<8x128xf32>
    %358 = arith.truncf %357 : vector<8x128xf32> to vector<8x128xbf16>
    %c0_86 = arith.constant 0 : index
    %c0_87 = arith.constant 0 : index
    %359 = vector.load %arg8[%c0_86, %c0_87] : memref<128x128xbf16, #tpu.memory_space<vmem>>, vector<128x128xbf16>
    %cst_88 = arith.constant dense<0.000000e+00> : vector<8x128xf32>
    %360 = tpu.matmul %358, %359, %cst_88 {dimension_numbers = #tpu.dot_dimension_numbers<[1], [0], [0], [1], [0, 0, 1, 1], [], []>} : vector<8x128xbf16>, vector<128x128xbf16>, vector<8x128xf32> -> vector<8x128xf32>
    %c0_89 = arith.constant 0 : index
    %c0_90 = arith.constant 0 : index
    %361 = vector.load %arg9[%c0_89, %c0_90] : memref<1x128xf32, #tpu.memory_space<vmem>>, vector<1x128xf32>
    %362 = vector.broadcast %361 : vector<1x128xf32> to vector<8x128xf32>
    %363 = arith.addf %360, %362 : vector<8x128xf32>
    %c0_91 = arith.constant 0 : index
    %c0_92 = arith.constant 0 : index
    %364 = vector.load %arg10[%c0_91, %c0_92] : memref<8x128xf32, #tpu.memory_space<vmem>>, vector<8x128xf32>
    tpu.vector_store %arg10[%c0_91, %c0_92], %363 {strides = array<i32>} : memref<8x128xf32, #tpu.memory_space<vmem>>, vector<8x128xf32>,
    return
  }
}

</mosaic_0001>

<bundles_post_ra>
// kernel: tpu_custom_call.1
= control target key start
LH: loop header
LB: loop body
LE: loop exit
PB: predicated region body
PF: predicated region fallthrough
CT: control target
= control target key end

     0   :  { %15 = vsyncpa [#allocation4], 0  ;;  %s2565_s0 = inlined_call_operand.vmem [shape: bf16[64,4], index: 0, kind: input, shape index: {}]   ;;  %s2566_s1 = inlined_call_operand.vmem [shape: bf16[4,128], index: 1, kind: input, shape index: {}]   ;;  %s2567_s2 = inlined_call_operand.hbm [shape: bf16[32,128], index: 2, kind: input, shape index: {}]   ;;  %s2568_s3 = inlined_call_operand.vmem [shape: f32[1,128], index: 3, kind: input, shape index: {}]   ;;  %s2569_s4 = inlined_call_operand.vmem [shape: bf16[64,128], index: 4, kind: input, shape index: {}]   ;;  %s2570_s5 = inlined_call_operand.vmem [shape: f32[1,128], index: 5, kind: input, shape index: {}]   ;;  %s2571_s6 = inlined_call_operand.hbm [shape: bf16[32,128], index: 6, kind: input, shape index: {}]   ;;  %s2572_s7 = inlined_call_operand.vmem [shape: f32[1,128], index: 7, kind: input, shape index: {}]   ;;  %s2573_s8 = inlined_call_operand.hbm [shape: bf16[128,128], index: 8, kind: input, shape index: {}]   ;;  %s2574_s9 = inlined_call_operand.vmem [shape: f32[1,128], index: 9, kind: input, shape index: {}]   ;;  %s2575_s10 = inlined_call_operand.hbm [shape: f32[8,128], index: 10, kind: output, shape index: {}]  }
   0x1   :  { %16 = vsyncpa [#allocation7], 0 }
   0x2   :  { %17 = vsyncpa [#allocation5], 0  ;;  %s2087_s13 = smov [#allocation6]   ;;  %s2088_s15 = smov [#allocation3]  }
   0x3   :  { %s45_s14 = sshll.u32 %s2087_s13, 4  ;;  %s27_s16 = sshll.u32 %s2088_s15, 4  ;;  %s46_s14 = int_to_ptr.vmem [resolvable:$true] %s45_s14  ;;  %s28_s16 = int_to_ptr.vmem [resolvable:$true] %s27_s16 }
   0x4   :  { %s2009_s17 = scalar_lea.vmem %s46_s14, 256  ;;  %p2014_p1 = scmp.lt.s32.totalorder %s46_s14, %s46_s14 }
   0x5   :  { %p2010_p0 = scmp.ne.s32.totalorder %s46_s14, %s2009_s17  ;;  %p2015_p2 = scmp.lt.s32.totalorder %s2009_s17, %s2009_s17 }
   0x7   :  { %p2016_p3 = por %p2015_p2, %p2014_p1 }
   0x9   :  { %p2017_p4 = pnand %p2016_p3, %p2010_p0 }
   0xb   :  { %2020 = shalt.err (!%p2017_p4)
}
   0xc   :  { %s2089_s18 = smov 64   ;;  %s2090_s19 = smov 4  }
   0xd   :  { %51 = dma.hbm_to_vmem [thread:$0]  %s2571_s6, 256, %s46_s14, [#allocation7], %s2089_s18, %s2089_s18, %s2090_s19  }
   0xe   :  { %s2029_s22 = scalar_lea.vmem %s28_s16, 256  ;;  %p2034_p6 = scmp.lt.s32.totalorder %s28_s16, %s28_s16 }
   0xf   :  { %p2030_p5 = scmp.ne.s32.totalorder %s28_s16, %s2029_s22  ;;  %p2035_p7 = scmp.lt.s32.totalorder %s2029_s22, %s2029_s22 }
  0x11   :  { %p2036_p8 = por %p2035_p7, %p2034_p6 }
  0x13   :  { %p2037_p9 = pnand %p2036_p8, %p2030_p5 }
  0x15   :  { %2040 = shalt.err (!%p2037_p9)
}
  0x16   :  { %33 = dma.hbm_to_vmem [thread:$0]  %s2567_s2, 256, %s28_s16, [#allocation4], %s2089_s18, %s2089_s18, %s2090_s19  }
  0x17   :  { %s2091_s25 = smov [#allocation8]  }
  0x18   :  { %s59_s26 = sshll.u32 %s2091_s25, 4  ;;  %s60_s26 = int_to_ptr.vmem [resolvable:$true] %s59_s26 }
  0x19   :  { %s2049_s27 = scalar_lea.vmem %s60_s26, 1024  ;;  %p2054_p11 = scmp.lt.s32.totalorder %s60_s26, %s60_s26 }
  0x1a   :  { %p2050_p10 = scmp.ne.s32.totalorder %s60_s26, %s2049_s27  ;;  %p2055_p12 = scmp.lt.s32.totalorder %s2049_s27, %s2049_s27 }
  0x1c   :  { %p2056_p13 = por %p2055_p12, %p2054_p11 }
  0x1e   :  { %p2057_p0 = pnand %p2056_p13, %p2050_p10 }
  0x20   :  { %2060 = shalt.err (!%p2057_p0)
}
  0x21   :  { %65 = dma.hbm_to_vmem [thread:$0]  %s2573_s8, 1024, %s60_s26, [#allocation7], %s2089_s18, %s2089_s18, %s2090_s19  }
  0x22   :  { %2081 = dma.done.wait [#allocation4], 256  }
  0x23   :  { %2082 = vsyncadd [#allocation4], 4294967040 }
  0x24   :  { %2083 = dma.done.wait [#allocation7], 1280  }
  0x25   :  { %2084 = vsyncadd [#allocation7], 4294966016  ;;  %v2092_v0 = vmov 0.0   ;;  %vm2093_vm0 = vmmov 0   ;;  %vm127_vm1 = vcmask 1041408   ;;  %vm114_vm2 = vcmask 31744  }
  0x26   :  { %1718 = vmatprep.subr.bf16.mxu1 %v2092_v0  ;;  %1722 = vmatprep.mubr.msk.bf16.mxu1 %vm2093_vm0, %v2092_v0  ;;  %v86_v1 = vld [vmem:[%s2566_s1] sm:$0x3]  ;;  %v2173_v3 = vld [vmem:[#allocation3 + $0x8] sm:$0xff]   ;;  %v2094_v7 = vmov 0   ;;  %v223_v17 = vlaneseq  ;;  %v2218_v29 = vld [vmem:[%s2569_s4 + $0x18] sm:$0xff]   ;;  %vm241_vm6 = vcmask 261120  }
  0x27   :  { %1906 = vmatprep.subr.msk.bf16.mxu0 %vm127_vm1, %v86_v1  ;;  %v129_v2 = vsel %vm127_vm1, %v86_v1, 0  ;;  %v1918_v4 = vld [vmem:[%s2565_s0] sm:$0xff]   ;;  %1719 = vmatpush3.bf16.msra.mxu1 %v2173_v3  ;;  %v1919_v5 = vld [vmem:[%s2565_s0 + $0x8] sm:$0xff]   ;;  %v1922_v30 = vld [vmem:[%s2565_s0 + $0x10] sm:$0xff]   ;;  %vm337_vm7 = vcmask 523264   ;;  %s2096_s28 = smov [#allocation9]  }
  0x28   :  { %1709 = vmatpush3.bf16.msra.mxu0 %v129_v2  ;;  %1710 = vmatprep.mubr.msk.bf16.mxu0 %vm114_vm2, %v1918_v4  ;;  %v2185_v6 = vld [vmem:[#allocation3] sm:$0xff]   ;;  %v224_v18 = vand.u32 127, %v223_v17  ;;  %v1923_v31 = vld [vmem:[%s2565_s0 + $0x18] sm:$0xff]   ;;  %v2231_v32 = vld [vmem:[%s2569_s4 + $0x10] sm:$0xff]   ;;  %s1573_s2 = sshll.u32 %s2096_s28, 4  ;;  %s1574_s2 = int_to_ptr.vmem [resolvable:$true] %s1573_s2 }
  0x29   :  { %1726 = vmatprep.subr.bf16.mxu0 %v2092_v0  ;;  %1720 = vmatprep.subr.bf16.mxu1 %v2092_v0  ;;  %v2201_v9 = vld [vmem:[%s2568_s3] ss:$0 sm:$0xff]  ;;  %s2095_s3 = smov 32   ;;  %v2241_v33 = vld [vmem:[%s2569_s4 + $0x8] sm:$0xff]   ;;  %p2066_p2 = scmp.lt.s32.totalorder %s1574_s2, %s1574_s2 }
  0x2a   :  { %vm225_vm3 = vcmp.ge.s32.totalorder %v224_v18, 64  ;;  %vm226_vm4 = vcmp.lt.s32.totalorder %v224_v18, 96  ;;  %v2249_v35 = vld [vmem:[%s2569_s4] sm:$0xff]  }
  0x2b   :  { %1711 = vmatmul.mubr.msk.bf16.vlgmr.msra.gmra.mxu0 %vm114_vm2, %v1919_v5  ;;  %1721 = vmatpush3.bf16.msra.mxu1 %v2185_v6  ;;  %vm2204_vm5 = vmand %vm225_vm3, %vm226_vm4  ;;  %v2288_v48 = vld [vmem:[%s2570_s5] ss:$0 sm:$0xff] }
  0x2c   :  { %1738 = vmatprep.subr.bf16.mxu1 %v2092_v0  ;;  %1727 = vmatpush3.bf16.msra.mxu0 %v2218_v29 }
  0x2d   :  { %1714 = vmatprep.mubr.msk.bf16.mxu0 %vm114_vm2, %v1922_v30  ;;  %1728 = vmatprep.subr.bf16.mxu0 %v2092_v0 }
  0x2e   :  { %1723 = vmatmul.mubr.bf16.vlgmr.msra.gmra.mxu1 %v2094_v7 }
  0x2f   :  { %1739 = vmatpush3.bf16.msra.mxu1 %v2173_v3  ;;  %1742 = vmatprep.mubr.msk.bf16.mxu1 %vm2093_vm0, %v2092_v0 }
  0x30   :  { %1740 = vmatprep.subr.bf16.mxu1 %v2092_v0  ;;  %1729 = vmatpush3.bf16.msra.mxu0 %v2231_v32 }
  0x31   :  { %1730 = vmatprep.subr.bf16.mxu0 %v2092_v0 }
  0x33   :  { %1741 = vmatpush3.bf16.msra.mxu1 %v2185_v6  ;;  %1715 = vmatmul.mubr.msk.bf16.gmra.mxu0 %vm114_vm2, %v1923_v31 }
  0x34   :  { %1746 = vmatprep.subr.bf16.mxu1 %v2092_v0  ;;  %1734 = vmatprep.mubr.msk.bf16.mxu0 %vm2093_vm0, %v2092_v0 }
  0x35   :  { %1731 = vmatpush3.bf16.msra.mxu0 %v2241_v33 }
  0x36   :  { %1732 = vmatprep.subr.bf16.mxu0 %v2092_v0 }
  0x39   :  { %1733 = vmatpush3.bf16.msra.mxu0 %v2249_v35 }
  0x3a   :  { %1758 = vmatprep.subr.bf16.mxu0 %v2092_v0 }
  0xeb   :  { %v2196_v8 = vpop.f32.mrf.mxu0 }
  0xec   :  { %v174_v31 = vadd.f32 %v2196_v8, %v2201_v9 }
  0xed   :  { %v165_v10 = vpop.f32.mrf.mxu0 }
  0xee   :  { %v166_v11 = vadd.f32 %v2201_v9, %v165_v10  ;;  %v279_v12 = vpop.f32.mrf.mxu1 }
  0xef   :  { %v2274_v41 = vpop.f32.mrf.mxu0 }
  0xf0   :  { %v285_v13 = vadd.f32 %v279_v12, %v166_v11  ;;  %v1724_v14 = vpop.f32.mrf.mxu1 }
  0xf1   :  { %v168_v42 = vpop.f32.mrf.mxu0 }
  0xf2   :  { %1937 = vtanh.f32 %v285_v13  ;;  %v282_v15 = vpop.f32.mrf.mxu1  ;;  %v169_v46 = vadd.f32 %v2201_v9, %v168_v42 }
  0xf3   :  { %v2276_v43 = vpop.f32.mrf.mxu0 }
  0xf4   :  { %v1725_v16 = vpop.f32.mrf.mxu1 }
  0xf5   :  { %v2278_v44 = vpop.f32.mrf.mxu0 }
  0xf7   :  { %v2280_v45 = vpop.f32.mrf.mxu0 }
  0xf9   :  { %v2283_v47 = vpop.f32.mrf.mxu0 }
  0xff   :  { %v1938_v19 = vpop.eup %1937 }
 0x100   :  { %v287_v20 = vmul.f32 0.5, %v1938_v19 }
 0x102   :  { %v288_v22 = vadd.f32 0.5, %v287_v20 }
 0x104   :  { %v289_v23 = vsel %vm2204_vm5, %v1938_v19, %v288_v22 }
 0x105   :  { %292 = vrot.lane.b32.xlu0 %v289_v23, %s2089_s18  ;;  %v290_v26 = vmul.f32 0.0, %v289_v23 }
 0x177   :  { %v293_v24 = vpop.permute.xlu0 %292 }
 0x178   :  { %v295_v25 = vmul.f32 %v293_v24, %v289_v23 }
 0x17a   :  { %297 = vrot.lane.b32.xlu0 %v295_v25, %s2095_s3 }
 0x1ec   :  { %v298_v27 = vpop.permute.xlu0 %297 }
 0x1ed   :  { %v2212_v28 = vadd.f32 %v298_v27, %v290_v26 }
 0x1ef   :  { %1939 = vtanh.f32 %v2212_v28 }
 0x1fc   :  { %v1940_v34 = vpop.eup %1939 }
 0x1fd   :  { %303 = vrot.lane.b32.xlu1 %v1940_v34, %s2089_s18 }
 0x26f   :  { %v304_v36 = vpop.permute.xlu1 %303 }
 0x270   :  { %v306_v37 = vmul.f32 %v304_v36, %v289_v23 }
 0x272   :  { %v307_v38 = vpack.c.bf16 %v306_v37, %v306_v37 }
 0x274   :  { %309 = vrot.lane.b32.xlu1 %v307_v38, %s2095_s3 }
 0x2e6   :  { %v310_v39 = vpop.permute.xlu1 %309 }
 0x2e7   :  { %v312_v40 = vsel %vm241_vm6, %v310_v39, 0  ;;  %1743 = vmatmul.mubr.msk.bf16.vlgmr.msra.gmra.mxu1 %vm241_vm6, %v310_v39 }
 0x2e8   :  { %1735 = vmatmul.mubr.msk.bf16.vlgmr.msra.gmra.mxu0 %vm337_vm7, %v312_v40  ;;  %1747 = vmatpush3.bf16.msra.mxu1 %v2218_v29 }
 0x2e9   :  { %1748 = vmatprep.subr.bf16.mxu1 %v2092_v0  ;;  %1759 = vmatpush3.bf16.msra.mxu0 %v2173_v3 }
 0x2ea   :  { %1760 = vmatprep.subr.bf16.mxu0 %v2092_v0  ;;  %1762 = vmatprep.mubr.msk.bf16.mxu0 %vm2093_vm0, %v2092_v0 }
 0x2eb   :  { %1754 = vmatprep.mubr.msk.bf16.mxu1 %vm2093_vm0, %v2092_v0 }
 0x2ec   :  { %1749 = vmatpush3.bf16.msra.mxu1 %v2231_v32 }
 0x2ed   :  { %1750 = vmatprep.subr.bf16.mxu1 %v2092_v0  ;;  %1761 = vmatpush3.bf16.msra.mxu0 %v2185_v6 }
 0x2ee   :  { %1798 = vmatprep.subr.bf16.mxu0 %v2092_v0 }
 0x2f0   :  { %1751 = vmatpush3.bf16.msra.mxu1 %v2241_v33 }
 0x2f1   :  { %1752 = vmatprep.subr.bf16.mxu1 %v2092_v0 }
 0x2f4   :  { %1753 = vmatpush3.bf16.msra.mxu1 %v2249_v35 }
 0x2f5   :  { %1766 = vmatprep.subr.bf16.mxu1 %v2092_v0 }
 0x3a7   :  { %v440_v49 = vpop.f32.mrf.mxu1 }
 0x3a8   :  { %v446_v50 = vadd.f32 %v440_v49, %v169_v46  ;;  %v374_v51 = vpop.f32.mrf.mxu0 }
 0x3a9   :  { %v375_v52 = vadd.f32 %v2288_v48, %v374_v51  ;;  %v1744_v53 = vpop.f32.mrf.mxu1 }
 0x3aa   :  { %1941 = vtanh.f32 %v446_v50  ;;  %v1736_v54 = vpop.f32.mrf.mxu0 }
 0x3ab   :  { %1943 = vtanh.f32 %v375_v52  ;;  %v443_v55 = vpop.f32.mrf.mxu1 }
 0x3ac   :  { %v377_v56 = vpop.f32.mrf.mxu0 }
 0x3ad   :  { %v1745_v57 = vpop.f32.mrf.mxu1 }
 0x3ae   :  { %v1737_v58 = vpop.f32.mrf.mxu0 }
 0x3b7   :  { %v1942_v59 = vpop.eup %1941 }
 0x3b8   :  { %v1944_v60 = vpop.eup %1943  ;;  %v448_v61 = vmul.f32 0.5, %v1942_v59 }
 0x3b9   :  { %v381_v62 = vmul.f32 0.5, %v1944_v60 }
 0x3ba   :  { %v449_v63 = vadd.f32 0.5, %v448_v61 }
 0x3bb   :  { %v382_v1 = vadd.f32 0.5, %v381_v62 }
 0x3bc   :  { %v450_v2 = vsel %vm2204_vm5, %v1942_v59, %v449_v63 }
 0x3bd   :  { %453 = vrot.lane.b32.xlu1 %v450_v2, %s2089_s18  ;;  %v383_v4 = vsel %vm2204_vm5, %v1944_v60, %v382_v1  ;;  %v451_v12 = vmul.f32 %v450_v2, %v2212_v28 }
 0x3be   :  { %386 = vrot.lane.b32.xlu0 %v383_v4, %s2089_s18  ;;  %v384_v14 = vmul.f32 0.0, %v383_v4 }
 0x42f   :  { %v454_v5 = vpop.permute.xlu1 %453 }
 0x430   :  { %v456_v7 = vmul.f32 %v454_v5, %v450_v2  ;;  %v387_v10 = vpop.permute.xlu0 %386 }
 0x431   :  { %v389_v11 = vmul.f32 %v387_v10, %v383_v4 }
 0x432   :  { %458 = vrot.lane.b32.xlu1 %v456_v7, %s2095_s3 }
 0x433   :  { %391 = vrot.lane.b32.xlu0 %v389_v11, %s2095_s3 }
 0x4a4   :  { %v459_v13 = vpop.permute.xlu1 %458 }
 0x4a5   :  { %v2300_v15 = vadd.f32 %v459_v13, %v451_v12  ;;  %v392_v16 = vpop.permute.xlu0 %391 }
 0x4a6   :  { %v2302_v17 = vadd.f32 %v392_v16, %v384_v14 }
 0x4a7   :  { %1945 = vtanh.f32 %v2300_v15 }
 0x4a8   :  { %1947 = vtanh.f32 %v2302_v17 }
 0x4b4   :  { %v1946_v18 = vpop.eup %1945 }
 0x4b5   :  { %v1948_v19 = vpop.eup %1947  ;;  %464 = vrot.lane.b32.xlu1 %v1946_v18, %s2089_s18 }
 0x4b6   :  { %397 = vrot.lane.b32.xlu0 %v1948_v19, %s2089_s18 }
 0x527   :  { %v465_v20 = vpop.permute.xlu1 %464 }
 0x528   :  { %v467_v22 = vmul.f32 %v465_v20, %v450_v2  ;;  %v398_v23 = vpop.permute.xlu0 %397 }
 0x529   :  { %v400_v24 = vmul.f32 %v398_v23, %v383_v4 }
 0x52a   :  { %v468_v25 = vpack.c.bf16 %v467_v22, %v467_v22 }
 0x52b   :  { %v401_v26 = vpack.c.bf16 %v400_v24, %v400_v24 }
 0x52c   :  { %470 = vrot.lane.b32.xlu0 %v468_v25, %s2095_s3 }
 0x52d   :  { %473 = vrot.lane.b32.xlu1 %v401_v26, %s2089_s18  ;;  %v177_v26 = vadd.f32 %v2274_v41, %v2201_v9 }
 0x59e   :  { %v471_v27 = vpop.permute.xlu0 %470 }
 0x59f   :  { %v474_v28 = vpop.permute.xlu1 %473  ;;  %1763 = vmatmul.mubr.msk.bf16.vlgmr.msra.gmra.mxu0 %vm241_vm6, %v471_v27 }
 0x5a0   :  { %v477_v30 = vsel %vm241_vm6, %v471_v27, %v474_v28  ;;  %1799 = vmatpush3.bf16.msra.mxu0 %v2173_v3  ;;  %1802 = vmatprep.mubr.msk.bf16.mxu0 %vm2093_vm0, %v2092_v0 }
 0x5a1   :  { %1755 = vmatmul.mubr.msk.bf16.vlgmr.msra.gmra.mxu1 %vm337_vm7, %v477_v30  ;;  %1800 = vmatprep.subr.bf16.mxu0 %v2092_v0 }
 0x5a2   :  { %1767 = vmatpush3.bf16.msra.mxu1 %v2218_v29  ;;  %1774 = vmatprep.mubr.msk.bf16.mxu1 %vm2093_vm0, %v2092_v0 }
 0x5a3   :  { %1768 = vmatprep.subr.bf16.mxu1 %v2092_v0 }
 0x5a4   :  { %1801 = vmatpush3.bf16.msra.mxu0 %v2185_v6 }
 0x5a5   :  { %1806 = vmatprep.subr.bf16.mxu0 %v2092_v0 }
 0x5a6   :  { %1769 = vmatpush3.bf16.msra.mxu1 %v2231_v32 }
 0x5a7   :  { %1770 = vmatprep.subr.bf16.mxu1 %v2092_v0 }
 0x5aa   :  { %1771 = vmatpush3.bf16.msra.mxu1 %v2241_v33 }
 0x5ab   :  { %1772 = vmatprep.subr.bf16.mxu1 %v2092_v0 }
 0x5ae   :  { %1773 = vmatpush3.bf16.msra.mxu1 %v2249_v35 }
 0x5af   :  { %1778 = vmatprep.subr.bf16.mxu1 %v2092_v0 }
 0x65f   :  { %v580_v34 = vpop.f32.mrf.mxu0 }
 0x660   :  { %v586_v36 = vadd.f32 %v580_v34, %v174_v31 }
 0x661   :  { %v514_v37 = vpop.f32.mrf.mxu1  ;;  %v1764_v38 = vpop.f32.mrf.mxu0 }
 0x662   :  { %1949 = vtanh.f32 %v586_v36  ;;  %v515_v39 = vadd.f32 %v2288_v48, %v514_v37 }
 0x663   :  { %v1756_v40 = vpop.f32.mrf.mxu1  ;;  %v583_v42 = vpop.f32.mrf.mxu0 }
 0x664   :  { %1951 = vtanh.f32 %v515_v39 }
 0x665   :  { %v517_v46 = vpop.f32.mrf.mxu1  ;;  %v1765_v49 = vpop.f32.mrf.mxu0 }
 0x667   :  { %v1757_v50 = vpop.f32.mrf.mxu1 }
 0x66f   :  { %v1950_v51 = vpop.eup %1949 }
 0x670   :  { %v588_v52 = vmul.f32 0.5, %v1950_v51 }
 0x671   :  { %v1952_v53 = vpop.eup %1951 }
 0x672   :  { %v589_v54 = vadd.f32 0.5, %v588_v52  ;;  %v521_v55 = vmul.f32 0.5, %v1952_v53 }
 0x674   :  { %v590_v8 = vsel %vm2204_vm5, %v1950_v51, %v589_v54  ;;  %v522_v56 = vadd.f32 0.5, %v521_v55 }
 0x675   :  { %593 = vrot.lane.b32.xlu1 %v590_v8, %s2089_s18  ;;  %v591_v62 = vmul.f32 %v590_v8, %v2300_v15 }
 0x676   :  { %v523_v57 = vsel %vm2204_vm5, %v1952_v53, %v522_v56 }
 0x677   :  { %526 = vrot.lane.b32.xlu0 %v523_v57, %s2089_s18  ;;  %v524_v2 = vmul.f32 %v523_v57, %v2302_v17 }
 0x6e7   :  { %v594_v58 = vpop.permute.xlu1 %593 }
 0x6e8   :  { %v596_v59 = vmul.f32 %v594_v58, %v590_v8 }
 0x6e9   :  { %v527_v60 = vpop.permute.xlu0 %526 }
 0x6ea   :  { %v529_v61 = vmul.f32 %v527_v60, %v523_v57  ;;  %598 = vrot.lane.b32.xlu1 %v596_v59, %s2095_s3 }
 0x6ec   :  { %531 = vrot.lane.b32.xlu0 %v529_v61, %s2095_s3 }
 0x75c   :  { %v599_v63 = vpop.permute.xlu1 %598 }
 0x75d   :  { %v2341_v1 = vadd.f32 %v599_v63, %v591_v62 }
 0x75e   :  { %v532_v4 = vpop.permute.xlu0 %531 }
 0x75f   :  { %1953 = vtanh.f32 %v2341_v1  ;;  %v534_v5 = vadd.f32 %v532_v4, %v524_v2 }
 0x761   :  { %1955 = vtanh.f32 %v534_v5 }
 0x76c   :  { %v1954_v7 = vpop.eup %1953 }
 0x76d   :  { %604 = vrot.lane.b32.xlu1 %v1954_v7, %s2089_s18 }
 0x76e   :  { %v1956_v10 = vpop.eup %1955 }
 0x76f   :  { %537 = vrot.lane.b32.xlu0 %v1956_v10, %s2089_s18  ;;  %v182_v10 = vadd.f32 %v2201_v9, %v2278_v44 }
 0x7df   :  { %v605_v11 = vpop.permute.xlu1 %604 }
 0x7e0   :  { %v607_v12 = vmul.f32 %v605_v11, %v590_v8 }
 0x7e1   :  { %v538_v13 = vpop.permute.xlu0 %537 }
 0x7e2   :  { %v608_v14 = vpack.c.bf16 %v607_v12, %v607_v12  ;;  %v540_v15 = vmul.f32 %v538_v13, %v523_v57 }
 0x7e4   :  { %v541_v16 = vpack.c.bf16 %v540_v15, %v540_v15  ;;  %610 = vrot.lane.b32.xlu0 %v608_v14, %s2095_s3 }
 0x7e6   :  { %613 = vrot.lane.b32.xlu1 %v541_v16, %s2089_s18 }
 0x856   :  { %v611_v17 = vpop.permute.xlu0 %610 }
 0x858   :  { %v614_v18 = vpop.permute.xlu1 %613 }
 0x859   :  { %v617_v19 = vsel %vm241_vm6, %v611_v17, %v614_v18 }
 0x85a   :  { %1775 = vmatmul.mubr.msk.bf16.vlgmr.msra.gmra.mxu1 %vm337_vm7, %v617_v19 }
 0x85b   :  { %1779 = vmatpush3.bf16.msra.mxu1 %v2173_v3  ;;  %1782 = vmatprep.mubr.msk.bf16.mxu1 %vm2093_vm0, %v2092_v0 }
 0x85c   :  { %1780 = vmatprep.subr.bf16.mxu1 %v2092_v0 }
 0x85f   :  { %1781 = vmatpush3.bf16.msra.mxu1 %v2185_v6 }
 0x860   :  { %1786 = vmatprep.subr.bf16.mxu1 %v2092_v0 }
 0x862   :  { %1783 = vmatmul.mubr.msk.bf16.vlgmr.msra.gmra.mxu1 %vm241_vm6, %v611_v17 }
 0x863   :  { %1787 = vmatpush3.bf16.msra.mxu1 %v2218_v29  ;;  %1794 = vmatprep.mubr.msk.bf16.mxu1 %vm2093_vm0, %v2092_v0 }
 0x864   :  { %1788 = vmatprep.subr.bf16.mxu1 %v2092_v0 }
 0x867   :  { %1789 = vmatpush3.bf16.msra.mxu1 %v2231_v32 }
 0x868   :  { %1790 = vmatprep.subr.bf16.mxu1 %v2092_v0 }
 0x86b   :  { %1791 = vmatpush3.bf16.msra.mxu1 %v2241_v33 }
 0x86c   :  { %1792 = vmatprep.subr.bf16.mxu1 %v2092_v0 }
 0x86f   :  { %1793 = vmatpush3.bf16.msra.mxu1 %v2249_v35 }
 0x870   :  { %1818 = vmatprep.subr.bf16.mxu1 %v2092_v0 }
 0x91a   :  { %v654_v20 = vpop.f32.mrf.mxu1 }
 0x91b   :  { %v655_v22 = vadd.f32 %v2288_v48, %v654_v20 }
 0x91c   :  { %v1776_v23 = vpop.f32.mrf.mxu1 }
 0x91d   :  { %1957 = vtanh.f32 %v655_v22 }
 0x91e   :  { %v657_v24 = vpop.f32.mrf.mxu1 }
 0x920   :  { %v1777_v25 = vpop.f32.mrf.mxu1 }
 0x922   :  { %v720_v27 = vpop.f32.mrf.mxu1 }
 0x923   :  { %v726_v28 = vadd.f32 %v720_v27, %v177_v26 }
 0x924   :  { %v1784_v30 = vpop.f32.mrf.mxu1 }
 0x925   :  { %1959 = vtanh.f32 %v726_v28 }
 0x926   :  { %v723_v31 = vpop.f32.mrf.mxu1 }
 0x928   :  { %v1785_v34 = vpop.f32.mrf.mxu1 }
 0x92a   :  { %v1958_v36 = vpop.eup %1957 }
 0x92b   :  { %v661_v37 = vmul.f32 0.5, %v1958_v36 }
 0x92d   :  { %v662_v38 = vadd.f32 0.5, %v661_v37 }
 0x92f   :  { %v663_v39 = vsel %vm2204_vm5, %v1958_v36, %v662_v38 }
 0x930   :  { %666 = vrot.lane.b32.xlu0 %v663_v39, %s2089_s18  ;;  %v664_v53 = vmul.f32 %v663_v39, %v534_v5 }
 0x932   :  { %v1960_v40 = vpop.eup %1959 }
 0x933   :  { %v728_v42 = vmul.f32 0.5, %v1960_v40 }
 0x935   :  { %v729_v46 = vadd.f32 0.5, %v728_v42 }
 0x937   :  { %v730_v41 = vsel %vm2204_vm5, %v1960_v40, %v729_v46 }
 0x938   :  { %733 = vrot.lane.b32.xlu1 %v730_v41, %s2089_s18  ;;  %v731_v8 = vmul.f32 %v730_v41, %v2341_v1 }
 0x9a2   :  { %v667_v49 = vpop.permute.xlu0 %666 }
 0x9a3   :  { %v669_v50 = vmul.f32 %v667_v49, %v663_v39 }
 0x9a5   :  { %671 = vrot.lane.b32.xlu0 %v669_v50, %s2095_s3 }
 0x9aa   :  { %v734_v51 = vpop.permute.xlu1 %733 }
 0x9ab   :  { %v736_v52 = vmul.f32 %v734_v51, %v730_v41 }
 0x9ad   :  { %738 = vrot.lane.b32.xlu1 %v736_v52, %s2095_s3 }
 0xa17   :  { %v672_v54 = vpop.permute.xlu0 %671 }
 0xa18   :  { %v2379_v55 = vadd.f32 %v672_v54, %v664_v53 }
 0xa1a   :  { %1961 = vtanh.f32 %v2379_v55 }
 0xa1f   :  { %v739_v56 = vpop.permute.xlu1 %738 }
 0xa20   :  { %v741_v57 = vadd.f32 %v739_v56, %v731_v8 }
 0xa22   :  { %1963 = vtanh.f32 %v741_v57 }
 0xa27   :  { %v1962_v58 = vpop.eup %1961 }
 0xa28   :  { %677 = vrot.lane.b32.xlu0 %v1962_v58, %s2089_s18  ;;  %v185_v58 = vadd.f32 %v2201_v9, %v2283_v47 }
 0xa2f   :  { %v1964_v59 = vpop.eup %1963 }
 0xa30   :  { %744 = vrot.lane.b32.xlu1 %v1964_v59, %s2089_s18 }
 0xa9a   :  { %v678_v60 = vpop.permute.xlu0 %677 }
 0xa9b   :  { %v680_v61 = vmul.f32 %v678_v60, %v663_v39 }
 0xa9d   :  { %v681_v62 = vpack.c.bf16 %v680_v61, %v680_v61 }
 0xa9f   :  { %753 = vrot.lane.b32.xlu1 %v681_v62, %s2089_s18 }
 0xaa2   :  { %v745_v63 = vpop.permute.xlu1 %744 }
 0xaa3   :  { %v747_v2 = vmul.f32 %v745_v63, %v730_v41 }
 0xaa5   :  { %v748_v4 = vpack.c.bf16 %v747_v2, %v747_v2 }
 0xaa7   :  { %750 = vrot.lane.b32.xlu0 %v748_v4, %s2095_s3 }
 0xb11   :  { %v754_v1 = vpop.permute.xlu1 %753 }
 0xb19   :  { %v751_v5 = vpop.permute.xlu0 %750 }
 0xb1a   :  { %v757_v7 = vsel %vm241_vm6, %v751_v5, %v754_v1  ;;  %1803 = vmatmul.mubr.msk.bf16.vlgmr.msra.gmra.mxu0 %vm241_vm6, %v751_v5 }
 0xb1b   :  { %1795 = vmatmul.mubr.msk.bf16.vlgmr.msra.gmra.mxu1 %vm337_vm7, %v757_v7  ;;  %1807 = vmatpush3.bf16.msra.mxu0 %v2218_v29 }
 0xb1c   :  { %1808 = vmatprep.subr.bf16.mxu0 %v2092_v0  ;;  %1819 = vmatpush3.bf16.msra.mxu1 %v2173_v3 }
 0xb1d   :  { %1820 = vmatprep.subr.bf16.mxu1 %v2092_v0  ;;  %1822 = vmatprep.mubr.msk.bf16.mxu1 %vm2093_vm0, %v2092_v0 }
 0xb1e   :  { %1814 = vmatprep.mubr.msk.bf16.mxu0 %vm2093_vm0, %v2092_v0 }
 0xb1f   :  { %1809 = vmatpush3.bf16.msra.mxu0 %v2231_v32 }
 0xb20   :  { %1810 = vmatprep.subr.bf16.mxu0 %v2092_v0  ;;  %1821 = vmatpush3.bf16.msra.mxu1 %v2185_v6 }
 0xb21   :  { %1826 = vmatprep.subr.bf16.mxu1 %v2092_v0 }
 0xb23   :  { %1811 = vmatpush3.bf16.msra.mxu0 %v2241_v33 }
 0xb24   :  { %1812 = vmatprep.subr.bf16.mxu0 %v2092_v0 }
 0xb27   :  { %1813 = vmatpush3.bf16.msra.mxu0 %v2249_v35 }
 0xb28   :  { %1838 = vmatprep.subr.bf16.mxu0 %v2092_v0 }
 0xbda   :  { %v860_v11 = vpop.f32.mrf.mxu0 }
 0xbdb   :  { %v866_v12 = vadd.f32 %v860_v11, %v182_v10  ;;  %v794_v13 = vpop.f32.mrf.mxu1 }
 0xbdc   :  { %v795_v14 = vadd.f32 %v2288_v48, %v794_v13  ;;  %v1804_v15 = vpop.f32.mrf.mxu0 }
 0xbdd   :  { %1965 = vtanh.f32 %v866_v12  ;;  %v1796_v16 = vpop.f32.mrf.mxu1 }
 0xbde   :  { %1967 = vtanh.f32 %v795_v14  ;;  %v863_v17 = vpop.f32.mrf.mxu0 }
 0xbdf   :  { %v797_v18 = vpop.f32.mrf.mxu1 }
 0xbe0   :  { %v1805_v19 = vpop.f32.mrf.mxu0 }
 0xbe1   :  { %v1797_v20 = vpop.f32.mrf.mxu1 }
 0xbea   :  { %v1966_v22 = vpop.eup %1965 }
 0xbeb   :  { %v1968_v23 = vpop.eup %1967  ;;  %v868_v24 = vmul.f32 0.5, %v1966_v22 }
 0xbec   :  { %v801_v25 = vmul.f32 0.5, %v1968_v23 }
 0xbed   :  { %v869_v26 = vadd.f32 0.5, %v868_v24 }
 0xbee   :  { %v802_v27 = vadd.f32 0.5, %v801_v25 }
 0xbef   :  { %v870_v44 = vsel %vm2204_vm5, %v1966_v22, %v869_v26 }
 0xbf0   :  { %873 = vrot.lane.b32.xlu1 %v870_v44, %s2089_s18  ;;  %v803_v28 = vsel %vm2204_vm5, %v1968_v23, %v802_v27  ;;  %v871_v37 = vmul.f32 %v870_v44, %v741_v57 }
 0xbf1   :  { %806 = vrot.lane.b32.xlu0 %v803_v28, %s2089_s18  ;;  %v804_v39 = vmul.f32 %v803_v28, %v2379_v55 }
 0xc62   :  { %v874_v30 = vpop.permute.xlu1 %873 }
 0xc63   :  { %v876_v31 = vmul.f32 %v874_v30, %v870_v44  ;;  %v807_v34 = vpop.permute.xlu0 %806 }
 0xc64   :  { %v809_v36 = vmul.f32 %v807_v34, %v803_v28 }
 0xc65   :  { %878 = vrot.lane.b32.xlu1 %v876_v31, %s2095_s3 }
 0xc66   :  { %811 = vrot.lane.b32.xlu0 %v809_v36, %s2095_s3 }
 0xcd7   :  { %v879_v38 = vpop.permute.xlu1 %878 }
 0xcd8   :  { %v2418_v40 = vadd.f32 %v879_v38, %v871_v37  ;;  %v812_v42 = vpop.permute.xlu0 %811 }
 0xcd9   :  { %v2420_v46 = vadd.f32 %v812_v42, %v804_v39 }
 0xcda   :  { %1969 = vtanh.f32 %v2418_v40 }
 0xcdb   :  { %1971 = vtanh.f32 %v2420_v46 }
 0xce7   :  { %v1970_v41 = vpop.eup %1969 }
 0xce8   :  { %v1972_v49 = vpop.eup %1971  ;;  %884 = vrot.lane.b32.xlu1 %v1970_v41, %s2089_s18 }
 0xce9   :  { %817 = vrot.lane.b32.xlu0 %v1972_v49, %s2089_s18 }
 0xd5a   :  { %v885_v50 = vpop.permute.xlu1 %884 }
 0xd5b   :  { %v887_v51 = vmul.f32 %v885_v50, %v870_v44  ;;  %v818_v52 = vpop.permute.xlu0 %817 }
 0xd5c   :  { %v820_v53 = vmul.f32 %v818_v52, %v803_v28 }
 0xd5d   :  { %v888_v54 = vpack.c.bf16 %v887_v51, %v887_v51 }
 0xd5e   :  { %v821_v55 = vpack.c.bf16 %v820_v53, %v820_v53 }
 0xd5f   :  { %890 = vrot.lane.b32.xlu0 %v888_v54, %s2095_s3 }
 0xd60   :  { %893 = vrot.lane.b32.xlu1 %v821_v55, %s2089_s18 }
 0xdd1   :  { %v891_v8 = vpop.permute.xlu0 %890 }
 0xdd2   :  { %1823 = vmatmul.mubr.msk.bf16.vlgmr.msra.gmra.mxu1 %vm241_vm6, %v891_v8  ;;  %v894_v56 = vpop.permute.xlu1 %893 }
 0xdd3   :  { %v897_v57 = vsel %vm241_vm6, %v891_v8, %v894_v56  ;;  %1827 = vmatpush3.bf16.msra.mxu1 %v2218_v29  ;;  %1834 = vmatprep.mubr.msk.bf16.mxu1 %vm2093_vm0, %v2092_v0 }
 0xdd4   :  { %1815 = vmatmul.mubr.msk.bf16.vlgmr.msra.gmra.mxu0 %vm337_vm7, %v897_v57  ;;  %1828 = vmatprep.subr.bf16.mxu1 %v2092_v0 }
 0xdd5   :  { %1839 = vmatpush3.bf16.msra.mxu0 %v2173_v3  ;;  %1842 = vmatprep.mubr.msk.bf16.mxu0 %vm2093_vm0, %v2092_v0 }
 0xdd6   :  { %1840 = vmatprep.subr.bf16.mxu0 %v2092_v0 }
 0xdd7   :  { %1829 = vmatpush3.bf16.msra.mxu1 %v2231_v32 }
 0xdd8   :  { %1830 = vmatprep.subr.bf16.mxu1 %v2092_v0 }
 0xdd9   :  { %1841 = vmatpush3.bf16.msra.mxu0 %v2185_v6 }
 0xdda   :  { %1846 = vmatprep.subr.bf16.mxu0 %v2092_v0 }
 0xddb   :  { %1831 = vmatpush3.bf16.msra.mxu1 %v2241_v33 }
 0xddc   :  { %1832 = vmatprep.subr.bf16.mxu1 %v2092_v0 }
 0xddf   :  { %1833 = vmatpush3.bf16.msra.mxu1 %v2249_v35 }
 0xde0   :  { %1858 = vmatprep.subr.bf16.mxu1 %v2092_v0 }
 0xe92   :  { %v1000_v59 = vpop.f32.mrf.mxu1 }
 0xe93   :  { %v1006_v60 = vadd.f32 %v1000_v59, %v185_v58 }
 0xe94   :  { %v934_v61 = vpop.f32.mrf.mxu0  ;;  %v1824_v62 = vpop.f32.mrf.mxu1 }
 0xe95   :  { %1973 = vtanh.f32 %v1006_v60  ;;  %v935_v63 = vadd.f32 %v2288_v48, %v934_v61 }
 0xe96   :  { %v1816_v2 = vpop.f32.mrf.mxu0  ;;  %v1003_v4 = vpop.f32.mrf.mxu1 }
 0xe97   :  { %1975 = vtanh.f32 %v935_v63 }
 0xe98   :  { %v937_v1 = vpop.f32.mrf.mxu0  ;;  %v1825_v5 = vpop.f32.mrf.mxu1 }
 0xe9a   :  { %v1817_v7 = vpop.f32.mrf.mxu0 }
 0xea2   :  { %v1974_v10 = vpop.eup %1973 }
 0xea3   :  { %v1008_v11 = vmul.f32 0.5, %v1974_v10 }
 0xea4   :  { %v1976_v12 = vpop.eup %1975 }
 0xea5   :  { %v1009_v13 = vadd.f32 0.5, %v1008_v11  ;;  %v941_v14 = vmul.f32 0.5, %v1976_v12 }
 0xea7   :  { %v1010_v47 = vsel %vm2204_vm5, %v1974_v10, %v1009_v13  ;;  %v942_v15 = vadd.f32 0.5, %v941_v14 }
 0xea8   :  { %1013 = vrot.lane.b32.xlu1 %v1010_v47, %s2089_s18  ;;  %v1011_v22 = vmul.f32 %v1010_v47, %v2418_v40 }
 0xea9   :  { %v943_v16 = vsel %vm2204_vm5, %v1976_v12, %v942_v15 }
 0xeaa   :  { %946 = vrot.lane.b32.xlu0 %v943_v16, %s2089_s18  ;;  %v944_v25 = vmul.f32 %v943_v16, %v2420_v46 }
 0xf1a   :  { %v1014_v17 = vpop.permute.xlu1 %1013 }
 0xf1b   :  { %v1016_v18 = vmul.f32 %v1014_v17, %v1010_v47 }
 0xf1c   :  { %v947_v19 = vpop.permute.xlu0 %946 }
 0xf1d   :  { %v949_v20 = vmul.f32 %v947_v19, %v943_v16  ;;  %1018 = vrot.lane.b32.xlu1 %v1016_v18, %s2095_s3 }
 0xf1f   :  { %951 = vrot.lane.b32.xlu0 %v949_v20, %s2095_s3 }
 0xf8f   :  { %v1019_v23 = vpop.permute.xlu1 %1018 }
 0xf90   :  { %v2459_v24 = vadd.f32 %v1019_v23, %v1011_v22 }
 0xf91   :  { %v952_v26 = vpop.permute.xlu0 %951 }
 0xf92   :  { %1977 = vtanh.f32 %v2459_v24  ;;  %v2463_v27 = vadd.f32 %v952_v26, %v944_v25 }
 0xf94   :  { %1979 = vtanh.f32 %v2463_v27 }
 0xf9f   :  { %v1978_v44 = vpop.eup %1977 }
 0xfa0   :  { %1024 = vrot.lane.b32.xlu1 %v1978_v44, %s2089_s18 }
 0xfa1   :  { %v1980_v28 = vpop.eup %1979 }
 0xfa2   :  { %957 = vrot.lane.b32.xlu0 %v1980_v28, %s2089_s18 }
0x1012   :  { %v1025_v30 = vpop.permute.xlu1 %1024 }
0x1013   :  { %v1027_v31 = vmul.f32 %v1025_v30, %v1010_v47 }
0x1014   :  { %v958_v34 = vpop.permute.xlu0 %957 }
0x1015   :  { %v1028_v36 = vpack.c.bf16 %v1027_v31, %v1027_v31  ;;  %v960_v37 = vmul.f32 %v958_v34, %v943_v16 }
0x1017   :  { %v961_v38 = vpack.c.bf16 %v960_v37, %v960_v37  ;;  %1030 = vrot.lane.b32.xlu0 %v1028_v36, %s2095_s3 }
0x1019   :  { %1033 = vrot.lane.b32.xlu1 %v961_v38, %s2089_s18 }
0x1089   :  { %v1031_v39 = vpop.permute.xlu0 %1030 }
0x108a   :  { %1843 = vmatmul.mubr.msk.bf16.vlgmr.msra.gmra.mxu0 %vm241_vm6, %v1031_v39 }
0x108b   :  { %v1034_v40 = vpop.permute.xlu1 %1033  ;;  %1847 = vmatpush3.bf16.msra.mxu0 %v2218_v29  ;;  %1854 = vmatprep.mubr.msk.bf16.mxu0 %vm2093_vm0, %v2092_v0 }
0x108c   :  { %v1037_v42 = vsel %vm241_vm6, %v1031_v39, %v1034_v40  ;;  %1848 = vmatprep.subr.bf16.mxu0 %v2092_v0 }
0x108d   :  { %1835 = vmatmul.mubr.msk.bf16.vlgmr.msra.gmra.mxu1 %vm337_vm7, %v1037_v42 }
0x108e   :  { %1859 = vmatpush3.bf16.msra.mxu1 %v2173_v3  ;;  %1862 = vmatprep.mubr.msk.bf16.mxu1 %vm2093_vm0, %v2092_v0  ;;  %v190_v3 = vadd.f32 %v2276_v43, %v2201_v9 }
0x108f   :  { %1849 = vmatpush3.bf16.msra.mxu0 %v2231_v32  ;;  %1860 = vmatprep.subr.bf16.mxu1 %v2092_v0 }
0x1090   :  { %1850 = vmatprep.subr.bf16.mxu0 %v2092_v0 }
0x1092   :  { %1861 = vmatpush3.bf16.msra.mxu1 %v2185_v6 }
0x1093   :  { %1851 = vmatpush3.bf16.msra.mxu0 %v2241_v33  ;;  %1866 = vmatprep.subr.bf16.mxu1 %v2092_v0 }
0x1094   :  { %1852 = vmatprep.subr.bf16.mxu0 %v2092_v0 }
0x1097   :  { %1853 = vmatpush3.bf16.msra.mxu0 %v2249_v35 }
0x1098   :  { %1878 = vmatprep.subr.bf16.mxu0 %v2092_v0 }
0x114a   :  { %v1140_v46 = vpop.f32.mrf.mxu0 }
0x114b   :  { %v1146_v41 = vadd.f32 %v1140_v46, %v190_v3 }
0x114c   :  { %v1844_v49 = vpop.f32.mrf.mxu0 }
0x114d   :  { %1981 = vtanh.f32 %v1146_v41  ;;  %v1074_v50 = vpop.f32.mrf.mxu1 }
0x114e   :  { %v1075_v6 = vadd.f32 %v2288_v48, %v1074_v50  ;;  %v1143_v51 = vpop.f32.mrf.mxu0 }
0x114f   :  { %v1836_v52 = vpop.f32.mrf.mxu1 }
0x1150   :  { %1983 = vtanh.f32 %v1075_v6  ;;  %v1845_v53 = vpop.f32.mrf.mxu0 }
0x1151   :  { %v1077_v54 = vpop.f32.mrf.mxu1 }
0x1153   :  { %v1837_v55 = vpop.f32.mrf.mxu1 }
0x115a   :  { %v1982_v8 = vpop.eup %1981 }
0x115b   :  { %v1148_v56 = vmul.f32 0.5, %v1982_v8 }
0x115d   :  { %v1984_v57 = vpop.eup %1983  ;;  %v1149_v58 = vadd.f32 0.5, %v1148_v56 }
0x115e   :  { %v1081_v59 = vmul.f32 0.5, %v1984_v57 }
0x115f   :  { %v1150_v43 = vsel %vm2204_vm5, %v1982_v8, %v1149_v58 }
0x1160   :  { %1153 = vrot.lane.b32.xlu1 %v1150_v43, %s2089_s18  ;;  %v1082_v60 = vadd.f32 0.5, %v1081_v59  ;;  %v1151_v1 = vmul.f32 %v1150_v43, %v2459_v24 }
0x1162   :  { %v1083_v61 = vsel %vm2204_vm5, %v1984_v57, %v1082_v60 }
0x1163   :  { %1086 = vrot.lane.b32.xlu0 %v1083_v61, %s2089_s18  ;;  %v1084_v10 = vmul.f32 %v1083_v61, %v2463_v27 }
0x11d2   :  { %v1154_v62 = vpop.permute.xlu1 %1153 }
0x11d3   :  { %v1156_v63 = vmul.f32 %v1154_v62, %v1150_v43 }
0x11d5   :  { %v1087_v2 = vpop.permute.xlu0 %1086  ;;  %1158 = vrot.lane.b32.xlu1 %v1156_v63, %s2095_s3 }
0x11d6   :  { %v1089_v4 = vmul.f32 %v1087_v2, %v1083_v61 }
0x11d8   :  { %1091 = vrot.lane.b32.xlu0 %v1089_v4, %s2095_s3 }
0x1247   :  { %v1159_v5 = vpop.permute.xlu1 %1158 }
0x1248   :  { %v1161_v7 = vadd.f32 %v1159_v5, %v1151_v1 }
0x124a   :  { %1985 = vtanh.f32 %v1161_v7  ;;  %v1092_v11 = vpop.permute.xlu0 %1091 }
0x124b   :  { %v1094_v12 = vadd.f32 %v1092_v11, %v1084_v10 }
0x124d   :  { %1987 = vtanh.f32 %v1094_v12 }
0x1257   :  { %v1986_v13 = vpop.eup %1985 }
0x1258   :  { %1164 = vrot.lane.b32.xlu1 %v1986_v13, %s2089_s18 }
0x125a   :  { %v1988_v14 = vpop.eup %1987 }
0x125b   :  { %1097 = vrot.lane.b32.xlu0 %v1988_v14, %s2089_s18 }
0x12ca   :  { %v1165_v47 = vpop.permute.xlu1 %1164 }
0x12cb   :  { %v1167_v15 = vmul.f32 %v1165_v47, %v1150_v43 }
0x12cd   :  { %v1168_v16 = vpack.c.bf16 %v1167_v15, %v1167_v15  ;;  %v1098_v17 = vpop.permute.xlu0 %1097 }
0x12ce   :  { %v1100_v18 = vmul.f32 %v1098_v17, %v1083_v61 }
0x12cf   :  { %1170 = vrot.lane.b32.xlu0 %v1168_v16, %s2095_s3  ;;  %v1928_v16 = vld [vmem:[#allocation6] sm:$0xff]  }
0x12d0   :  { %v1101_v19 = vpack.c.bf16 %v1100_v18, %v1100_v18 }
0x12d2   :  { %1173 = vrot.lane.b32.xlu1 %v1101_v19, %s2089_s18 }
0x1341   :  { %v1171_v20 = vpop.permute.xlu0 %1170 }
0x1342   :  { %1863 = vmatmul.mubr.msk.bf16.vlgmr.msra.gmra.mxu1 %vm241_vm6, %v1171_v20 }
0x1343   :  { %1867 = vmatpush3.bf16.msra.mxu1 %v2218_v29  ;;  %1874 = vmatprep.mubr.msk.bf16.mxu1 %vm2093_vm0, %v2092_v0  ;;  %v193_v29 = vadd.f32 %v2280_v45, %v2201_v9 }
0x1344   :  { %v1174_v22 = vpop.permute.xlu1 %1173  ;;  %1868 = vmatprep.subr.bf16.mxu1 %v2092_v0 }
0x1345   :  { %v1177_v23 = vsel %vm241_vm6, %v1171_v20, %v1174_v22  ;;  %v1929_v20 = vld [vmem:[#allocation8 + $0x38] sm:$0xff]  }
0x1346   :  { %1855 = vmatmul.mubr.msk.bf16.vlgmr.msra.gmra.mxu0 %vm337_vm7, %v1177_v23  ;;  %v1930_v23 = vld [vmem:[#allocation8 + $0x30] sm:$0xff]  }
0x1347   :  { %1869 = vmatpush3.bf16.msra.mxu1 %v2231_v32  ;;  %1882 = vmatprep.mubr.msk.bf16.mxu0 %vm2093_vm0, %v2092_v0 }
0x1348   :  { %1870 = vmatprep.subr.bf16.mxu1 %v2092_v0 }
0x134b   :  { %1871 = vmatpush3.bf16.msra.mxu1 %v2241_v33 }
0x134c   :  { %1872 = vmatprep.subr.bf16.mxu1 %v2092_v0 }
0x134f   :  { %1873 = vmatpush3.bf16.msra.mxu1 %v2249_v35 }
0x1402   :  { %v1280_v24 = vpop.f32.mrf.mxu1 }
0x1403   :  { %v1286_v25 = vadd.f32 %v1280_v24, %v193_v29  ;;  %v1931_v29 = vld [vmem:[#allocation8 + $0x28] sm:$0xff]   ;;  %v1932_v24 = vld [vmem:[#allocation8 + $0x20] sm:$0xff]  }
0x1404   :  { %v1864_v26 = vpop.f32.mrf.mxu1 }
0x1405   :  { %1989 = vtanh.f32 %v1286_v25  ;;  %v1933_v25 = vld [vmem:[#allocation8 + $0x18] sm:$0xff]   ;;  %v1934_v26 = vld [vmem:[#allocation8 + $0x10] sm:$0xff]  }
0x1406   :  { %v1214_v27 = vpop.f32.mrf.mxu0  ;;  %v1283_v32 = vpop.f32.mrf.mxu1 }
0x1407   :  { %v1215_v44 = vadd.f32 %v2288_v48, %v1214_v27  ;;  %v1935_v27 = vld [vmem:[#allocation8 + $0x8] sm:$0xff]   ;;  %v1936_v32 = vld [vmem:[#allocation8] sm:$0xff]  }
0x1408   :  { %v1856_v28 = vpop.f32.mrf.mxu0  ;;  %v1865_v30 = vpop.f32.mrf.mxu1 }
0x1409   :  { %1991 = vtanh.f32 %v1215_v44  ;;  %v1614_v44 = vld [vmem:[%s2572_s7] ss:$0 sm:$0xff]  ;;  %s2061_s7 = scalar_lea.vmem %s1574_s2, 128 }
0x140a   :  { %v1217_v31 = vpop.f32.mrf.mxu0  ;;  %p2062_p1 = scmp.ne.s32.totalorder %s1574_s2, %s2061_s7  ;;  %p2067_p3 = scmp.lt.s32.totalorder %s2061_s7, %s2061_s7 }
0x140c   :  { %v1857_v33 = vpop.f32.mrf.mxu0  ;;  %p2068_p4 = por %p2067_p3, %p2066_p2 }
0x140e   :  { %p2069_p5 = pnand %p2068_p4, %p2062_p1 }
0x1412   :  { %v1990_v34 = vpop.eup %1989 }
0x1413   :  { %v1288_v36 = vmul.f32 0.5, %v1990_v34 }
0x1415   :  { %v1289_v37 = vadd.f32 0.5, %v1288_v36 }
0x1416   :  { %v1992_v35 = vpop.eup %1991 }
0x1417   :  { %v1290_v9 = vsel %vm2204_vm5, %v1990_v34, %v1289_v37  ;;  %v1221_v45 = vmul.f32 0.5, %v1992_v35 }
0x1418   :  { %1293 = vrot.lane.b32.xlu1 %v1290_v9, %s2089_s18  ;;  %v1291_v41 = vmul.f32 %v1290_v9, %v1161_v7 }
0x1419   :  { %v1222_v38 = vadd.f32 0.5, %v1221_v45 }
0x141b   :  { %v1223_v39 = vsel %vm2204_vm5, %v1992_v35, %v1222_v38 }
0x141c   :  { %1226 = vrot.lane.b32.xlu0 %v1223_v39, %s2089_s18  ;;  %v1224_v6 = vmul.f32 %v1223_v39, %v1094_v12 }
0x148a   :  { %v1294_v40 = vpop.permute.xlu1 %1293 }
0x148b   :  { %v1296_v42 = vmul.f32 %v1294_v40, %v1290_v9 }
0x148d   :  { %1298 = vrot.lane.b32.xlu1 %v1296_v42, %s2095_s3 }
0x148e   :  { %v1227_v3 = vpop.permute.xlu0 %1226 }
0x148f   :  { %v1229_v46 = vmul.f32 %v1227_v3, %v1223_v39 }
0x1491   :  { %1231 = vrot.lane.b32.xlu0 %v1229_v46, %s2095_s3 }
0x14ff   :  { %v1299_v49 = vpop.permute.xlu1 %1298 }
0x1500   :  { %v1301_v50 = vadd.f32 %v1299_v49, %v1291_v41 }
0x1502   :  { %1993 = vtanh.f32 %v1301_v50 }
0x1503   :  { %v1232_v51 = vpop.permute.xlu0 %1231 }
0x1504   :  { %v1234_v52 = vadd.f32 %v1232_v51, %v1224_v6 }
0x1506   :  { %1995 = vtanh.f32 %v1234_v52 }
0x150f   :  { %v1994_v53 = vpop.eup %1993 }
0x1510   :  { %1304 = vrot.lane.b32.xlu1 %v1994_v53, %s2089_s18 }
0x1513   :  { %v1996_v54 = vpop.eup %1995 }
0x1514   :  { %1237 = vrot.lane.b32.xlu0 %v1996_v54, %s2089_s18 }
0x1582   :  { %v1305_v55 = vpop.permute.xlu1 %1304 }
0x1583   :  { %v1307_v8 = vmul.f32 %v1305_v55, %v1290_v9 }
0x1585   :  { %v1308_v56 = vpack.c.bf16 %v1307_v8, %v1307_v8 }
0x1586   :  { %v1238_v57 = vpop.permute.xlu0 %1237 }
0x1587   :  { %v1240_v58 = vmul.f32 %v1238_v57, %v1223_v39  ;;  %1310 = vrot.lane.b32.xlu0 %v1308_v56, %s2095_s3 }
0x1589   :  { %v1241_v59 = vpack.c.bf16 %v1240_v58, %v1240_v58 }
0x158b   :  { %1313 = vrot.lane.b32.xlu1 %v1241_v59, %s2089_s18 }
0x15f9   :  { %v1311_v43 = vpop.permute.xlu0 %1310 }
0x15fd   :  { %v1314_v60 = vpop.permute.xlu1 %1313 }
0x15fe   :  { %v1317_v61 = vsel %vm241_vm6, %v1311_v43, %v1314_v60 }
0x15ff   :  { %1875 = vmatmul.mubr.msk.bf16.vlgmr.msra.gmra.mxu1 %vm337_vm7, %v1317_v61 }
0x16bf   :  { %v1354_v62 = vpop.f32.mrf.mxu1 }
0x16c0   :  { %v1355_v63 = vadd.f32 %v2288_v48, %v1354_v62  ;;  %v1927_v48 = vld [vmem:[#allocation6 + $0x8] sm:$0xff]  }
0x16c1   :  { %v1876_v2 = vpop.f32.mrf.mxu1  ;;  %1879 = vmatpush3.bf16.msra.mxu0 %v1927_v48 }
0x16c2   :  { %1997 = vtanh.f32 %v1355_v63  ;;  %1880 = vmatprep.subr.bf16.mxu0 %v2092_v0 }
0x16c3   :  { %v1357_v4 = vpop.f32.mrf.mxu1 }
0x16c5   :  { %v1877_v1 = vpop.f32.mrf.mxu1  ;;  %1881 = vmatpush3.bf16.msra.mxu0 %v1928_v16 }
0x16c6   :  { %1886 = vmatprep.subr.bf16.mxu0 %v2092_v0 }
0x16cf   :  { %v1998_v5 = vpop.eup %1997 }
0x16d0   :  { %v1361_v7 = vmul.f32 0.5, %v1998_v5 }
0x16d2   :  { %v1362_v10 = vadd.f32 0.5, %v1361_v7 }
0x16d4   :  { %v1363_v11 = vsel %vm2204_vm5, %v1998_v5, %v1362_v10 }
0x16d5   :  { %1366 = vrot.lane.b32.xlu0 %v1363_v11, %s2089_s18  ;;  %v1364_v14 = vmul.f32 %v1363_v11, %v1234_v52 }
0x1747   :  { %v1367_v12 = vpop.permute.xlu0 %1366 }
0x1748   :  { %v1369_v13 = vmul.f32 %v1367_v12, %v1363_v11 }
0x174a   :  { %1371 = vrot.lane.b32.xlu1 %v1369_v13, %s2095_s3 }
0x17bc   :  { %v1372_v47 = vpop.permute.xlu1 %1371 }
0x17bd   :  { %v1374_v15 = vadd.f32 %v1372_v47, %v1364_v14 }
0x17bf   :  { %1999 = vtanh.f32 %v1374_v15 }
0x17cc   :  { %v2000_v21 = vpop.eup %1999 }
0x17cd   :  { %1377 = vrot.lane.b32.xlu0 %v2000_v21, %s2089_s18 }
0x183f   :  { %v1378_v17 = vpop.permute.xlu0 %1377 }
0x1840   :  { %v1380_v18 = vmul.f32 %v1378_v17, %v1363_v11 }
0x1842   :  { %v1381_v19 = vpack.c.bf16 %v1380_v18, %v1380_v18 }
0x1844   :  { %1394 = vrot.lane.b32.xlu1 %v1381_v19, %s2095_s3 }
0x18b6   :  { %v1395_v22 = vpop.permute.xlu1 %1394 }
0x18b7   :  { %1883 = vmatmul.mubr.msk.bf16.vlgmr.msra.gmra.mxu0 %vm241_vm6, %v1395_v22 }
0x18b8   :  { %1887 = vmatpush3.bf16.msra.mxu0 %v1929_v20  ;;  %1902 = vmatprep.mubr.msk.bf16.mxu0 %vm2093_vm0, %v2092_v0 }
0x18b9   :  { %1888 = vmatprep.subr.bf16.mxu0 %v2092_v0 }
0x18bc   :  { %1889 = vmatpush3.bf16.msra.mxu0 %v1930_v23 }
0x18bd   :  { %1890 = vmatprep.subr.bf16.mxu0 %v2092_v0 }
0x18c0   :  { %1891 = vmatpush3.bf16.msra.mxu0 %v1931_v29 }
0x18c1   :  { %1892 = vmatprep.subr.bf16.mxu0 %v2092_v0 }
0x18c4   :  { %1893 = vmatpush3.bf16.msra.mxu0 %v1932_v24 }
0x18c5   :  { %1894 = vmatprep.subr.bf16.mxu0 %v2092_v0 }
0x18c8   :  { %1895 = vmatpush3.bf16.msra.mxu0 %v1933_v25 }
0x18c9   :  { %1896 = vmatprep.subr.bf16.mxu0 %v2092_v0 }
0x18cc   :  { %1897 = vmatpush3.bf16.msra.mxu0 %v1934_v26 }
0x18cd   :  { %1898 = vmatprep.subr.bf16.mxu0 %v2092_v0 }
0x18d0   :  { %1899 = vmatpush3.bf16.msra.mxu0 %v1935_v27 }
0x18d1   :  { %1900 = vmatprep.subr.bf16.mxu0 %v2092_v0  ;;  %v1618_v0 = vld [vmem:[%s2574_s9] ss:$0 sm:$0xff] }
0x18d4   :  { %1901 = vmatpush3.bf16.msra.mxu0 %v1936_v32 }
0x1977   :  { %v1445_v28 = vpop.f32.mrf.mxu0 }
0x1978   :  { %v1446_v30 = vadd.f32 %v1614_v44, %v1445_v28 }
0x1979   :  { %v1884_v31 = vpop.f32.mrf.mxu0 }
0x197a   :  { %vm1451_vm8 = vcmp.gt.f32.partialorder %v1446_v30, 0.0  ;;  %v1452_v33 = vmul.f32 0.01, %v1446_v30 }
0x197b   :  { %v1448_v34 = vpop.f32.mrf.mxu0 }
0x197c   :  { %v1453_v36 = vsel %vm1451_vm8, %v1446_v30, %v1452_v33 }
0x197d   :  { %v1454_v37 = vpack.c.bf16 %v1453_v36, %v1453_v36  ;;  %v1885_v35 = vpop.f32.mrf.mxu0 }
0x197f   :  { %1903 = vmatmul.mubr.bf16.vlgmr.msra.gmra.mxu0 %v1454_v37 }
0x1a3f   :  { %v1560_v9 = vpop.f32.mrf.mxu0 }
0x1a40   :  { %v1561_v45 = vadd.f32 %v1618_v0, %v1560_v9 }
0x1a41   :  { %v1904_v38 = vpop.f32.mrf.mxu0 }
0x1a42   :  { %1566 = vst [vmem:[#allocation9] sm:$0xff] %v1561_v45 }
0x1a43   :  { %v1563_v39 = vpop.f32.mrf.mxu0 }
0x1a44   :  { %2072 = shalt.err (!%p2069_p5)
}
0x1a45   :  { %1576 = dma.vmem_to_hbm [thread:$0]  %s1574_s2, 128, %s2575_s10, [#allocation5]   ;;  %v1905_v40 = vpop.f32.mrf.mxu0 }
0x1a46   :  { %2085 = dma.done.wait [#allocation5], 128  }
0x1a47   :  { %2086 = vsyncadd [#allocation5], 4294967168 }
0x1a48   :  { %1580 = vsyncpa [#allocation4], 1 }
0x1a49   :  { %1581 = vsyncpa [#allocation7], 1 }
0x1a4a   :  { %1582 = vsyncpa [#allocation5], 1 }

</bundles_post_ra>
